<compile_context>
chip_gen: v5e
topology: v5e:2x2
jax: 0.10.0
libtpu: 0.0.40
codegen_flags: <defaults>
</compile_context>

<pallas_src>
import functools
import math

import jax
import jax.numpy as jnp
from jax.experimental import pallas as pl
from jax.experimental.pallas import tpu as pltpu


_FUSE_MAX_N = 2048  # max output width for the fused matmul + add + LayerNorm epilogue


@functools.lru_cache(maxsize=None)
def _chip_budget():
    """(preferred_tile, vmem_limit_bytes) per TPU generation.

    128 MiB VMEM parts (v5e / v6e): 1024-wide tiles, ~96 MiB scoped limit.
    64 MiB parts (v7x): 512-wide tiles, 48 MiB limit (headroom for double buffers).
    """
    try:
        cap = getattr(pltpu.get_tpu_info(), "vmem_capacity_bytes", 64 * 1024 * 1024)
    except Exception:
        cap = 64 * 1024 * 1024
    if cap >= 100 * 1024 * 1024:
        return 1024, 96 * 1024 * 1024
    return 512, 48 * 1024 * 1024


def _pick_tile(dim, preferred, align):
    """Largest align-multiple divisor of `dim` that is <= preferred, else full dim.

    All shapes in this model (d_model, d_ff, padded vocab, B*S) are chosen as
    multiples of the relevant alignments, so the full-dim fallback is only hit for
    small dims that trivially fit VMEM.
    """
    if dim <= preferred:
        return dim
    t = max((preferred // align) * align, align)
    while t > align and dim % t:
        t -= align
    return t if dim % t == 0 else dim


# ----------------------------------------------------------------------------
# Pallas kernels
# ----------------------------------------------------------------------------
def matmul_kernel(x_ref, w_ref, b_ref, o_ref, acc_ref, *, activation):
    # Tiled o = x @ w + b (optional ReLU). bf16 MXU operands, f32 accumulation.
    @pl.when(pl.program_id(2) == 0)
    def _():
        acc_ref[...] = jnp.zeros_like(acc_ref)

    acc_ref[...] += jnp.dot(x_ref[...], w_ref[...], preferred_element_type=jnp.float32)

    @pl.when(pl.program_id(2) == pl.num_programs(2) - 1)
    def _():
        y = acc_ref[...] + b_ref[...].astype(jnp.float32)
        if activation == "relu":
            y = jnp.maximum(y, 0.0)
        o_ref[...] = y.astype(o_ref.dtype)


def _ln(x, g, b):
    # PyTorch nn.LayerNorm semantics: biased variance, eps=1e-5, affine (f32 math).
    mu = jnp.mean(x, axis=-1, keepdims=True)
    var = jnp.mean((x - mu) ** 2, axis=-1, keepdims=True)
    return (x - mu) * jax.lax.rsqrt(var + 1e-5) * g + b


def matmul_add_ln_kernel(x_ref, w_ref, b_ref, r_ref, g_ref, bb_ref, o_ref, acc_ref):
    # Tiled y = x @ w + b, then fused residual add + LayerNorm in the last-k epilogue.
    # Requires the full output row (single N tile) so mean/var see every column.
    @pl.when(pl.program_id(1) == 0)
    def _():
        acc_ref[...] = jnp.zeros_like(acc_ref)

    acc_ref[...] += jnp.dot(x_ref[...], w_ref[...], preferred_element_type=jnp.float32)

    @pl.when(pl.program_id(1) == pl.num_programs(1) - 1)
    def _():
        y = acc_ref[...] + b_ref[...].astype(jnp.float32) + r_ref[...].astype(jnp.float32)
        o_ref[...] = _ln(y, g_ref[...], bb_ref[...]).astype(o_ref.dtype)


def add_layernorm_kernel(x_ref, r_ref, g_ref, b_ref, o_ref):
    # Fused residual add + layernorm (fallback when the matmul epilogue fusion
    # cannot be used). bf16 I/O, f32 math.
    x = x_ref[...].astype(jnp.float32) + r_ref[...].astype(jnp.float32)
    o_ref[...] = _ln(x, g_ref[...], b_ref[...]).astype(o_ref.dtype)


def layernorm_kernel(x_ref, g_ref, b_ref, o_ref):
    x = x_ref[...].astype(jnp.float32)
    o_ref[...] = _ln(x, g_ref[...], b_ref[...]).astype(o_ref.dtype)


def attention_head_kernel(q_ref, k_ref, v_ref, o_ref, *, scale):
    # One (batch, head) pair per grid step; head split done entirely by BlockSpec.
    # q/k/v blocks: (1, S, Dh) bf16.
    S = q_ref.shape[1]
    q = q_ref[0]
    k = k_ref[0]
    v = v_ref[0]

    # QK^T contracting last dims directly (no explicit K transpose); bf16 MXU, f32 acc.
    s = jax.lax.dot_general(
        q, k, (((1,), (1,)), ((), ())),
        preferred_element_type=jnp.float32) * scale                          # (S, S)

    # Causal (autoregressive) mask generated in-kernel.
    row = jax.lax.broadcasted_iota(jnp.int32, (S, S), 0)
    col = jax.lax.broadcasted_iota(jnp.int32, (S, S), 1)
    s = jnp.where(col <= row, s, jnp.float32(-1e9))

    s = s - jnp.max(s, axis=-1, keepdims=True)
    p = jnp.exp(s)
    p = p * pl.reciprocal(jnp.sum(p, axis=-1, keepdims=True), approx=True)

    ctx = jax.lax.dot_general(
        p.astype(jnp.bfloat16), v, (((1,), (0,)), ((), ())),
        preferred_element_type=jnp.float32)                                  # (S, Dh)
    o_ref[0] = ctx.astype(o_ref.dtype)


def attention_loop_kernel(qkv_ref, o_ref, *, num_heads, d_model, scale):
    # Fallback for small / non-lane-aligned head dims: one batch element per grid
    # step, static per-head column slicing; each head's context stored directly
    # into its output column block (no concatenate, minimal vreg pressure).
    S = qkv_ref.shape[1]
    Dh = d_model // num_heads

    row = jax.lax.broadcasted_iota(jnp.int32, (S, S), 0)
    col = jax.lax.broadcasted_iota(jnp.int32, (S, S), 1)
    keep = col <= row

    for h in range(num_heads):
        q = qkv_ref[0, :, h * Dh:(h + 1) * Dh]                              # (S, Dh)
        k = qkv_ref[0, :, d_model + h * Dh:d_model + (h + 1) * Dh]          # (S, Dh)
        v = qkv_ref[0, :, 2 * d_model + h * Dh:2 * d_model + (h + 1) * Dh]  # (S, Dh)

        s = jax.lax.dot_general(
            q, k, (((1,), (1,)), ((), ())),
            preferred_element_type=jnp.float32) * scale                      # (S, S)
        s = jnp.where(keep, s, jnp.float32(-1e9))
        s = s - jnp.max(s, axis=-1, keepdims=True)
        p = jnp.exp(s)
        p = p * pl.reciprocal(jnp.sum(p, axis=-1, keepdims=True), approx=True)

        ctx = jax.lax.dot_general(
            p.astype(jnp.bfloat16), v, (((1,), (0,)), ((), ())),
            preferred_element_type=jnp.float32)                              # (S, Dh)
        # Head order h*Dh + dh matches torch transpose(1,2).reshape(...) layout.
        o_ref[0, :, h * Dh:(h + 1) * Dh] = ctx.astype(o_ref.dtype)


# ----------------------------------------------------------------------------
# Pallas wrappers
# ----------------------------------------------------------------------------
def pallas_linear(x2d, w, b, activation=None, out_dtype=jnp.bfloat16):
    M, K = x2d.shape
    _, N = w.shape
    pref, vmem_limit = _chip_budget()
    tm = _pick_tile(M, pref, 16)    # 16-row align: bf16 vregs pack [16, 128]
    tn = _pick_tile(N, pref, 128)
    tk = _pick_tile(K, pref, 128)
    b2d = b.reshape(1, N)
    return pl.pallas_call(
        functools.partial(matmul_kernel, activation=activation),
        out_shape=jax.ShapeDtypeStruct((M, N), out_dtype),
        grid=(M // tm, N // tn, K // tk),
        in_specs=[
            pl.BlockSpec((tm, tk), lambda i, j, k: (i, k)),
            pl.BlockSpec((tk, tn), lambda i, j, k: (k, j)),
            pl.BlockSpec((1, tn), lambda i, j, k: (0, j)),
        ],
        out_specs=pl.BlockSpec((tm, tn), lambda i, j, k: (i, j)),
        scratch_shapes=[pltpu.VMEM((tm, tn), jnp.float32)],
        compiler_params=pltpu.CompilerParams(
            dimension_semantics=("parallel", "parallel", "arbitrary"),
            vmem_limit_bytes=vmem_limit,
        ),
    )(x2d, w, b2d)


def pallas_add_layernorm(x2d, r2d, gamma, beta):
    M, D = x2d.shape
    pref, vmem_limit = _chip_budget()
    tm = _pick_tile(M, pref, 8)
    g2d = gamma.reshape(1, D)
    b2d = beta.reshape(1, D)
    return pl.pallas_call(
        add_layernorm_kernel,
        out_shape=jax.ShapeDtypeStruct((M, D), jnp.bfloat16),
        grid=(M // tm,),
        in_specs=[
            pl.BlockSpec((tm, D), lambda i: (i, 0)),
            pl.BlockSpec((tm, D), lambda i: (i, 0)),
            pl.BlockSpec((1, D), lambda i: (0, 0)),
            pl.BlockSpec((1, D), lambda i: (0, 0)),
        ],
        out_specs=pl.BlockSpec((tm, D), lambda i: (i, 0)),
        compiler_params=pltpu.CompilerParams(
            dimension_semantics=("parallel",),
            vmem_limit_bytes=vmem_limit,
        ),
    )(x2d, r2d, g2d, b2d)


def pallas_layernorm(x2d, gamma, beta):
    M, D = x2d.shape
    pref, vmem_limit = _chip_budget()
    tm = _pick_tile(M, pref, 8)
    g2d = gamma.reshape(1, D)
    b2d = beta.reshape(1, D)
    return pl.pallas_call(
        layernorm_kernel,
        out_shape=jax.ShapeDtypeStruct((M, D), jnp.bfloat16),
        grid=(M // tm,),
        in_specs=[
            pl.BlockSpec((tm, D), lambda i: (i, 0)),
            pl.BlockSpec((1, D), lambda i: (0, 0)),
            pl.BlockSpec((1, D), lambda i: (0, 0)),
        ],
        out_specs=pl.BlockSpec((tm, D), lambda i: (i, 0)),
        compiler_params=pltpu.CompilerParams(
            dimension_semantics=("parallel",),
            vmem_limit_bytes=vmem_limit,
        ),
    )(x2d, g2d, b2d)


def pallas_linear_add_layernorm(x2d, w, b, resid2d, gamma, beta):
    """y = LayerNorm(resid + x @ w + b), fused into the matmul epilogue when the
    full output row fits a single N tile; otherwise falls back to two kernels."""
    M, K = x2d.shape
    _, N = w.shape
    pref, vmem_limit = _chip_budget()
    if N > _FUSE_MAX_N or N > pref:
        y = pallas_linear(x2d, w, b)
        return pallas_add_layernorm(y, resid2d, gamma, beta)

    tm = _pick_tile(M, pref, 16)
    tk = _pick_tile(K, pref, 128)
    b2d = b.reshape(1, N)
    g2d = gamma.reshape(1, N)
    bb2d = beta.reshape(1, N)
    return pl.pallas_call(
        matmul_add_ln_kernel,
        out_shape=jax.ShapeDtypeStruct((M, N), jnp.bfloat16),
        grid=(M // tm, K // tk),
        in_specs=[
            pl.BlockSpec((tm, tk), lambda i, k: (i, k)),
            pl.BlockSpec((tk, N), lambda i, k: (k, 0)),
            pl.BlockSpec((1, N), lambda i, k: (0, 0)),
            pl.BlockSpec((tm, N), lambda i, k: (i, 0)),
            pl.BlockSpec((1, N), lambda i, k: (0, 0)),
            pl.BlockSpec((1, N), lambda i, k: (0, 0)),
        ],
        out_specs=pl.BlockSpec((tm, N), lambda i, k: (i, 0)),
        scratch_shapes=[pltpu.VMEM((tm, N), jnp.float32)],
        compiler_params=pltpu.CompilerParams(
            dimension_semantics=("parallel", "arbitrary"),
            vmem_limit_bytes=vmem_limit,
        ),
    )(x2d, w, b2d, resid2d, g2d, bb2d)


def pallas_attention(qkv3d, num_heads, scale):
    B, S, threeD = qkv3d.shape
    D = threeD // 3
    Dh = D // num_heads
    _, vmem_limit = _chip_budget()

    if Dh % 128 == 0:
        # Head split purely in BlockSpec: grid=(B, H), three views of the fused QKV
        # activation whose index_maps pick the Q/K/V head column blocks.
        return pl.pallas_call(
            functools.partial(attention_head_kernel, scale=scale),
            out_shape=jax.ShapeDtypeStruct((B, S, D), jnp.bfloat16),
            grid=(B, num_heads),
            in_specs=[
                pl.BlockSpec((1, S, Dh), lambda b, h: (b, 0, h)),
                pl.BlockSpec((1, S, Dh), lambda b, h: (b, 0, num_heads + h)),
                pl.BlockSpec((1, S, Dh), lambda b, h: (b, 0, 2 * num_heads + h)),
            ],
            out_specs=pl.BlockSpec((1, S, Dh), lambda b, h: (b, 0, h)),
            compiler_params=pltpu.CompilerParams(
                dimension_semantics=("parallel", "parallel"),
                vmem_limit_bytes=vmem_limit,
            ),
        )(qkv3d, qkv3d, qkv3d)

    # Fallback for small / non-lane-aligned head dims.
    # TODO(synk): for long sequences (esp. v7x 64 MiB VMEM) switch to a flash-style
    # online-softmax tiling over KV instead of materializing (S, S) scores per head.
    return pl.pallas_call(
        functools.partial(attention_loop_kernel, num_heads=num_heads,
                          d_model=D, scale=scale),
        out_shape=jax.ShapeDtypeStruct((B, S, D), jnp.bfloat16),
        grid=(B,),
        in_specs=[pl.BlockSpec((1, S, threeD), lambda b: (b, 0, 0))],
        out_specs=pl.BlockSpec((1, S, D), lambda b: (b, 0, 0)),
        compiler_params=pltpu.CompilerParams(
            dimension_semantics=("parallel",),
            vmem_limit_bytes=vmem_limit,
        ),
    )(qkv3d)


# ----------------------------------------------------------------------------
# Model definition (forward semantics of ARGPT, post-LN GPT blocks, eval mode)
# ----------------------------------------------------------------------------
def transformer_block(p, x, num_heads):
    B, S, D = x.shape
    x2 = x.reshape(B * S, D)                                         # bf16
    qkv = pallas_linear(x2, p["w_qkv"], p["b_qkv"])                  # (B*S, 3D) bf16
    ctx = pallas_attention(qkv.reshape(B, S, 3 * D), num_heads,
                           1.0 / math.sqrt(D // num_heads))          # (B, S, D) bf16
    # wo projection fused with residual add + LN1 (dropout = identity, eval mode)
    h = pallas_linear_add_layernorm(ctx.reshape(B * S, D), p["wo"], p["bo"],
                                    x2, p["ln1_g"], p["ln1_b"])
    ff = pallas_linear(h, p["w1"], p["b1"], activation="relu")
    # w2 projection fused with residual add + LN2
    h = pallas_linear_add_layernorm(ff, p["w2"], p["b2"],
                                    h, p["ln2_g"], p["ln2_b"])
    return h.reshape(B, S, D)


def argpt_forward(params, x_ids, *, num_heads, vocab_size):
    B, S = x_ids.shape
    D = params["tok_emb"].shape[1]

    # token + position embeddings (gather is plain-JAX glue); dropout = identity
    tok = jnp.take(params["tok_emb"], x_ids, axis=0)          # (B, S, D)
    pos = params["pos_emb"][:S]                               # (S, D)
    h = (tok + pos[None, :, :]).astype(jnp.bfloat16)

    for layer_params in params["layers"]:
        h = transformer_block(layer_params, h, num_heads)

    h2 = pallas_layernorm(h.reshape(B * S, D), params["norm_g"], params["norm_b"])
    logits = pallas_linear(h2, params["out_w"], params["out_b"],
                           out_dtype=jnp.float32)                  # (B*S, padded vocab)
    logits = logits[:, :vocab_size]                                # drop zero pad cols
    return logits.reshape(B, S, vocab_size)


# ----------------------------------------------------------------------------
# Deterministic parameter construction
# ----------------------------------------------------------------------------
def init_params(key, vocab_size, d_model, num_layers, d_ff, max_seq_length):
    def dense(k, fan_in, fan_out):
        return jax.random.normal(k, (fan_in, fan_out), jnp.float32) * 0.02

    vocab_padded = ((vocab_size + 127) // 128) * 128  # lane-dense logits output

    keys = jax.random.split(key, 3 + num_layers)
    out_w = dense(keys[2], d_model, vocab_size)
    out_w = jnp.pad(out_w, ((0, 0), (0, vocab_padded - vocab_size)))
    params = {
        "tok_emb": jax.random.normal(keys[0], (vocab_size, d_model), jnp.float32) * 0.02,
        "pos_emb": jax.random.normal(keys[1], (max_seq_length, d_model), jnp.float32) * 0.02,
        "norm_g": jnp.ones((d_model,), jnp.float32),
        "norm_b": jnp.zeros((d_model,), jnp.float32),
        "out_w": out_w.astype(jnp.bfloat16),
        "out_b": jnp.zeros((vocab_padded,), jnp.float32),
        "layers": [],
    }
    for l in range(num_layers):
        lk = jax.random.split(keys[3 + l], 6)
        w_qkv = jnp.concatenate(
            [dense(lk[0], d_model, d_model),
             dense(lk[1], d_model, d_model),
             dense(lk[2], d_model, d_model)], axis=1)            # (D, 3D) fused QKV
        params["layers"].append({
            "w_qkv": w_qkv.astype(jnp.bfloat16),
            "b_qkv": jnp.zeros((3 * d_model,), jnp.float32),
            "wo": dense(lk[3], d_model, d_model).astype(jnp.bfloat16),
            "bo": jnp.zeros((d_model,), jnp.float32),
            "ln1_g": jnp.ones((d_model,), jnp.float32),
            "ln1_b": jnp.zeros((d_model,), jnp.float32),
            "ln2_g": jnp.ones((d_model,), jnp.float32),
            "ln2_b": jnp.zeros((d_model,), jnp.float32),
            "w1": dense(lk[4], d_model, d_ff).astype(jnp.bfloat16),
            "b1": jnp.zeros((d_ff,), jnp.float32),
            "w2": dense(lk[5], d_ff, d_model).astype(jnp.bfloat16),
            "b2": jnp.zeros((d_model,), jnp.float32),
        })
    return params


if __name__ == "__main__":
    def run(vocab_size, d_model, num_heads, num_layers, d_ff, max_seq_length, B, S):
        key = jax.random.PRNGKey(0)
        pkey, xkey = jax.random.split(key)
        params = init_params(pkey, vocab_size, d_model, num_layers, d_ff,
                             max_seq_length)
        x_ids = jax.random.randint(xkey, (B, S), 0, vocab_size, dtype=jnp.int32)
        # Causal (autoregressive) mask is generated inside the attention kernels.
        fwd = jax.jit(functools.partial(argpt_forward, num_heads=num_heads,
                                        vocab_size=vocab_size))
        logits = fwd(params, x_ids)
        jax.block_until_ready(logits)
        assert logits.shape == (B, S, vocab_size)
        assert bool(jnp.all(jnp.isfinite(logits)))

    # Small config (head dim < 128 -> per-head-loop attention fallback path).
    run(vocab_size=50, d_model=32, num_heads=4, num_layers=2, d_ff=64,
        max_seq_length=16, B=2, S=8)
    # Lane-aligned head dim (Dh = 128) -> BlockSpec head-grid attention path.
    run(vocab_size=64, d_model=256, num_heads=2, num_layers=1, d_ff=512,
        max_seq_length=16, B=2, S=16)

    print("KERNEL_OK")
</pallas_src>

<mosaic_0001>
module attributes {stable_mosaic.version = 11 : i64} {
  func.func @matmul_kernel(%arg0: i32, %arg1: i32, %arg2: i32, %arg3: memref<16x32xbf16, #tpu.memory_space<vmem>>, %arg4: memref<32x96xbf16, #tpu.memory_space<vmem>>, %arg5: memref<1x96xf32, #tpu.memory_space<vmem>>, %arg6: memref<16x96xbf16, #tpu.memory_space<vmem>>, %arg7: memref<16x96xf32, #tpu.memory_space<vmem>>) attributes {dimension_semantics = [#tpu.dimension_semantics<parallel>, #tpu.dimension_semantics<parallel>, #tpu.dimension_semantics<arbitrary>], iteration_bounds = array<i64: 1, 1, 1>, scalar_prefetch = 0 : i64, scratch_operands = 1 : i64, tpu.core_type = #tpu.core_type<tc>, window_params = [{transform_indices = @transform_0, window_bounds = array<i64: 16, 32>}, {transform_indices = @transform_1, window_bounds = array<i64: 32, 96>}, {transform_indices = @transform_2, window_bounds = array<i64: 1, 96>}, {transform_indices = @transform_3, window_bounds = array<i64: 16, 96>}]} {
    %c0_i32 = arith.constant 0 : i32
    %0 = arith.cmpi eq, %arg2, %c0_i32 : i32
    %1 = arith.extui %0 : i1 to i32
    %c0_i32_0 = arith.constant 0 : i32
    %2 = arith.cmpi ne, %1, %c0_i32_0 : i32
    scf.if %2 {
      %cst_10 = arith.constant 0.000000e+00 : f32
      %12 = vector.broadcast %cst_10 : f32 to vector<16x96xf32>
      %c0_11 = arith.constant 0 : index
      %c0_12 = arith.constant 0 : index
      %13 = vector.load %arg7[%c0_11, %c0_12] : memref<16x96xf32, #tpu.memory_space<vmem>>, vector<16x96xf32>
      tpu.vector_store %arg7[%c0_11, %c0_12], %12 {strides = array<i32>} : memref<16x96xf32, #tpu.memory_space<vmem>>, vector<16x96xf32>,
    } else {
    }
    %c0 = arith.constant 0 : index
    %c0_1 = arith.constant 0 : index
    %3 = vector.load %arg7[%c0, %c0_1] : memref<16x96xf32, #tpu.memory_space<vmem>>, vector<16x96xf32>
    %c0_2 = arith.constant 0 : index
    %c0_3 = arith.constant 0 : index
    %4 = vector.load %arg3[%c0_2, %c0_3] : memref<16x32xbf16, #tpu.memory_space<vmem>>, vector<16x32xbf16>
    %c0_4 = arith.constant 0 : index
    %c0_5 = arith.constant 0 : index
    %5 = vector.load %arg4[%c0_4, %c0_5] : memref<32x96xbf16, #tpu.memory_space<vmem>>, vector<32x96xbf16>
    %cst = arith.constant dense<0.000000e+00> : vector<16x96xf32>
    %6 = tpu.matmul %4, %5, %cst {dimension_numbers = #tpu.dot_dimension_numbers<[1], [0], [0], [1], [0, 0, 1, 1], [], []>} : vector<16x32xbf16>, vector<32x96xbf16>, vector<16x96xf32> -> vector<16x96xf32>
    %7 = arith.addf %3, %6 : vector<16x96xf32>
    %c0_6 = arith.constant 0 : index
    %c0_7 = arith.constant 0 : index
    %8 = vector.load %arg7[%c0_6, %c0_7] : memref<16x96xf32, #tpu.memory_space<vmem>>, vector<16x96xf32>
    tpu.vector_store %arg7[%c0_6, %c0_7], %7 {strides = array<i32>} : memref<16x96xf32, #tpu.memory_space<vmem>>, vector<16x96xf32>,
    %c0_i32_8 = arith.constant 0 : i32
    %9 = arith.cmpi eq, %arg2, %c0_i32_8 : i32
    %10 = arith.extui %9 : i1 to i32
    %c0_i32_9 = arith.constant 0 : i32
    %11 = arith.cmpi ne, %10, %c0_i32_9 : i32
    scf.if %11 {
      %c0_10 = arith.constant 0 : index
      %c0_11 = arith.constant 0 : index
      %12 = vector.load %arg7[%c0_10, %c0_11] : memref<16x96xf32, #tpu.memory_space<vmem>>, vector<16x96xf32>
      %c0_12 = arith.constant 0 : index
      %c0_13 = arith.constant 0 : index
      %13 = vector.load %arg5[%c0_12, %c0_13] : memref<1x96xf32, #tpu.memory_space<vmem>>, vector<1x96xf32>
      %14 = vector.broadcast %13 : vector<1x96xf32> to vector<16x96xf32>
      %15 = arith.addf %12, %14 : vector<16x96xf32>
      %16 = arith.truncf %15 : vector<16x96xf32> to vector<16x96xbf16>
      %c0_14 = arith.constant 0 : index
      %c0_15 = arith.constant 0 : index
      %17 = vector.load %arg6[%c0_14, %c0_15] : memref<16x96xbf16, #tpu.memory_space<vmem>>, vector<16x96xbf16>
      tpu.vector_store %arg6[%c0_14, %c0_15], %16 {strides = array<i32>} : memref<16x96xbf16, #tpu.memory_space<vmem>>, vector<16x96xbf16>,
    } else {
    }
    return
  }
  func.func @transform_0(%arg0: i32, %arg1: i32, %arg2: i32) -> (i32, i32) {
    %c0_i32 = arith.constant 0 : i32
    return %arg0, %arg2 : i32, i32
  }
  func.func @transform_1(%arg0: i32, %arg1: i32, %arg2: i32) -> (i32, i32) {
    %c0_i32 = arith.constant 0 : i32
    return %arg2, %arg1 : i32, i32
  }
  func.func @transform_2(%arg0: i32, %arg1: i32, %arg2: i32) -> (i32, i32) {
    %c0_i32 = arith.constant 0 : i32
    %c0_i32_0 = arith.constant 0 : i32
    return %c0_i32, %arg1 : i32, i32
  }
  func.func @transform_3(%arg0: i32, %arg1: i32, %arg2: i32) -> (i32, i32) {
    %c0_i32 = arith.constant 0 : i32
    return %arg0, %arg1 : i32, i32
  }
}

module attributes {stable_mosaic.version = 11 : i64} {
  func.func @matmul_kernel(%arg0: i32, %arg1: i32, %arg2: i32, %arg3: memref<16x32xbf16, #tpu.memory_space<vmem>>, %arg4: memref<32x64xbf16, #tpu.memory_space<vmem>>, %arg5: memref<1x64xf32, #tpu.memory_space<vmem>>, %arg6: memref<16x64xbf16, #tpu.memory_space<vmem>>, %arg7: memref<16x64xf32, #tpu.memory_space<vmem>>) attributes {dimension_semantics = [#tpu.dimension_semantics<parallel>, #tpu.dimension_semantics<parallel>, #tpu.dimension_semantics<arbitrary>], iteration_bounds = array<i64: 1, 1, 1>, scalar_prefetch = 0 : i64, scratch_operands = 1 : i64, tpu.core_type = #tpu.core_type<tc>, window_params = [{transform_indices = @transform_0, window_bounds = array<i64: 16, 32>}, {transform_indices = @transform_1, window_bounds = array<i64: 32, 64>}, {transform_indices = @transform_2, window_bounds = array<i64: 1, 64>}, {transform_indices = @transform_3, window_bounds = array<i64: 16, 64>}]} {
    %c0_i32 = arith.constant 0 : i32
    %0 = arith.cmpi eq, %arg2, %c0_i32 : i32
    %1 = arith.extui %0 : i1 to i32
    %c0_i32_0 = arith.constant 0 : i32
    %2 = arith.cmpi ne, %1, %c0_i32_0 : i32
    scf.if %2 {
      %cst_10 = arith.constant 0.000000e+00 : f32
      %12 = vector.broadcast %cst_10 : f32 to vector<16x64xf32>
      %c0_11 = arith.constant 0 : index
      %c0_12 = arith.constant 0 : index
      %13 = vector.load %arg7[%c0_11, %c0_12] : memref<16x64xf32, #tpu.memory_space<vmem>>, vector<16x64xf32>
      tpu.vector_store %arg7[%c0_11, %c0_12], %12 {strides = array<i32>} : memref<16x64xf32, #tpu.memory_space<vmem>>, vector<16x64xf32>,
    } else {
    }
    %c0 = arith.constant 0 : index
    %c0_1 = arith.constant 0 : index
    %3 = vector.load %arg7[%c0, %c0_1] : memref<16x64xf32, #tpu.memory_space<vmem>>, vector<16x64xf32>
    %c0_2 = arith.constant 0 : index
    %c0_3 = arith.constant 0 : index
    %4 = vector.load %arg3[%c0_2, %c0_3] : memref<16x32xbf16, #tpu.memory_space<vmem>>, vector<16x32xbf16>
    %c0_4 = arith.constant 0 : index
    %c0_5 = arith.constant 0 : index
    %5 = vector.load %arg4[%c0_4, %c0_5] : memref<32x64xbf16, #tpu.memory_space<vmem>>, vector<32x64xbf16>
    %cst = arith.constant dense<0.000000e+00> : vector<16x64xf32>
    %6 = tpu.matmul %4, %5, %cst {dimension_numbers = #tpu.dot_dimension_numbers<[1], [0], [0], [1], [0, 0, 1, 1], [], []>} : vector<16x32xbf16>, vector<32x64xbf16>, vector<16x64xf32> -> vector<16x64xf32>
    %7 = arith.addf %3, %6 : vector<16x64xf32>
    %c0_6 = arith.constant 0 : index
    %c0_7 = arith.constant 0 : index
    %8 = vector.load %arg7[%c0_6, %c0_7] : memref<16x64xf32, #tpu.memory_space<vmem>>, vector<16x64xf32>
    tpu.vector_store %arg7[%c0_6, %c0_7], %7 {strides = array<i32>} : memref<16x64xf32, #tpu.memory_space<vmem>>, vector<16x64xf32>,
    %c0_i32_8 = arith.constant 0 : i32
    %9 = arith.cmpi eq, %arg2, %c0_i32_8 : i32
    %10 = arith.extui %9 : i1 to i32
    %c0_i32_9 = arith.constant 0 : i32
    %11 = arith.cmpi ne, %10, %c0_i32_9 : i32
    scf.if %11 {
      %c0_10 = arith.constant 0 : index
      %c0_11 = arith.constant 0 : index
      %12 = vector.load %arg7[%c0_10, %c0_11] : memref<16x64xf32, #tpu.memory_space<vmem>>, vector<16x64xf32>
      %c0_12 = arith.constant 0 : index
      %c0_13 = arith.constant 0 : index
      %13 = vector.load %arg5[%c0_12, %c0_13] : memref<1x64xf32, #tpu.memory_space<vmem>>, vector<1x64xf32>
      %14 = vector.broadcast %13 : vector<1x64xf32> to vector<16x64xf32>
      %15 = arith.addf %12, %14 : vector<16x64xf32>
      %cst_14 = arith.constant 0.000000e+00 : f32
      %16 = vector.broadcast %cst_14 : f32 to vector<16x64xf32>
      %17 = arith.maximumf %15, %16 : vector<16x64xf32>
      %18 = arith.truncf %17 : vector<16x64xf32> to vector<16x64xbf16>
      %c0_15 = arith.constant 0 : index
      %c0_16 = arith.constant 0 : index
      %19 = vector.load %arg6[%c0_15, %c0_16] : memref<16x64xbf16, #tpu.memory_space<vmem>>, vector<16x64xbf16>
      tpu.vector_store %arg6[%c0_15, %c0_16], %18 {strides = array<i32>} : memref<16x64xbf16, #tpu.memory_space<vmem>>, vector<16x64xbf16>,
    } else {
    }
    return
  }
  func.func @transform_0(%arg0: i32, %arg1: i32, %arg2: i32) -> (i32, i32) {
    %c0_i32 = arith.constant 0 : i32
    return %arg0, %arg2 : i32, i32
  }
  func.func @transform_1(%arg0: i32, %arg1: i32, %arg2: i32) -> (i32, i32) {
    %c0_i32 = arith.constant 0 : i32
    return %arg2, %arg1 : i32, i32
  }
  func.func @transform_2(%arg0: i32, %arg1: i32, %arg2: i32) -> (i32, i32) {
    %c0_i32 = arith.constant 0 : i32
    %c0_i32_0 = arith.constant 0 : i32
    return %c0_i32, %arg1 : i32, i32
  }
  func.func @transform_3(%arg0: i32, %arg1: i32, %arg2: i32) -> (i32, i32) {
    %c0_i32 = arith.constant 0 : i32
    return %arg0, %arg1 : i32, i32
  }
}

module attributes {stable_mosaic.version = 11 : i64} {
  func.func @matmul_add_ln_kernel(%arg0: i32, %arg1: i32, %arg2: memref<16x32xbf16, #tpu.memory_space<vmem>>, %arg3: memref<32x32xbf16, #tpu.memory_space<vmem>>, %arg4: memref<1x32xf32, #tpu.memory_space<vmem>>, %arg5: memref<16x32xbf16, #tpu.memory_space<vmem>>, %arg6: memref<1x32xf32, #tpu.memory_space<vmem>>, %arg7: memref<1x32xf32, #tpu.memory_space<vmem>>, %arg8: memref<16x32xbf16, #tpu.memory_space<vmem>>, %arg9: memref<16x32xf32, #tpu.memory_space<vmem>>) attributes {dimension_semantics = [#tpu.dimension_semantics<parallel>, #tpu.dimension_semantics<arbitrary>], iteration_bounds = array<i64: 1, 1>, scalar_prefetch = 0 : i64, scratch_operands = 1 : i64, tpu.core_type = #tpu.core_type<tc>, window_params = [{transform_indices = @transform_0, window_bounds = array<i64: 16, 32>}, {transform_indices = @transform_1, window_bounds = array<i64: 32, 32>}, {pipeline_mode = #tpu.pipeline_mode<synchronous>, transform_indices = @transform_2, window_bounds = array<i64: 1, 32>}, {transform_indices = @transform_3, window_bounds = array<i64: 16, 32>}, {pipeline_mode = #tpu.pipeline_mode<synchronous>, transform_indices = @transform_4, window_bounds = array<i64: 1, 32>}, {pipeline_mode = #tpu.pipeline_mode<synchronous>, transform_indices = @transform_5, window_bounds = array<i64: 1, 32>}, {transform_indices = @transform_6, window_bounds = array<i64: 16, 32>}]} {
    %c0_i32 = arith.constant 0 : i32
    %0 = arith.cmpi eq, %arg1, %c0_i32 : i32
    %1 = arith.extui %0 : i1 to i32
    %c0_i32_0 = arith.constant 0 : i32
    %2 = arith.cmpi ne, %1, %c0_i32_0 : i32
    scf.if %2 {
      %cst_10 = arith.constant 0.000000e+00 : f32
      %12 = vector.broadcast %cst_10 : f32 to vector<16x32xf32>
      %c0_11 = arith.constant 0 : index
      %c0_12 = arith.constant 0 : index
      %13 = vector.load %arg9[%c0_11, %c0_12] : memref<16x32xf32, #tpu.memory_space<vmem>>, vector<16x32xf32>
      tpu.vector_store %arg9[%c0_11, %c0_12], %12 {strides = array<i32>} : memref<16x32xf32, #tpu.memory_space<vmem>>, vector<16x32xf32>,
    } else {
    }
    %c0 = arith.constant 0 : index
    %c0_1 = arith.constant 0 : index
    %3 = vector.load %arg9[%c0, %c0_1] : memref<16x32xf32, #tpu.memory_space<vmem>>, vector<16x32xf32>
    %c0_2 = arith.constant 0 : index
    %c0_3 = arith.constant 0 : index
    %4 = vector.load %arg2[%c0_2, %c0_3] : memref<16x32xbf16, #tpu.memory_space<vmem>>, vector<16x32xbf16>
    %c0_4 = arith.constant 0 : index
    %c0_5 = arith.constant 0 : index
    %5 = vector.load %arg3[%c0_4, %c0_5] : memref<32x32xbf16, #tpu.memory_space<vmem>>, vector<32x32xbf16>
    %cst = arith.constant dense<0.000000e+00> : vector<16x32xf32>
    %6 = tpu.matmul %4, %5, %cst {dimension_numbers = #tpu.dot_dimension_numbers<[1], [0], [0], [1], [0, 0, 1, 1], [], []>} : vector<16x32xbf16>, vector<32x32xbf16>, vector<16x32xf32> -> vector<16x32xf32>
    %7 = arith.addf %3, %6 : vector<16x32xf32>
    %c0_6 = arith.constant 0 : index
    %c0_7 = arith.constant 0 : index
    %8 = vector.load %arg9[%c0_6, %c0_7] : memref<16x32xf32, #tpu.memory_space<vmem>>, vector<16x32xf32>
    tpu.vector_store %arg9[%c0_6, %c0_7], %7 {strides = array<i32>} : memref<16x32xf32, #tpu.memory_space<vmem>>, vector<16x32xf32>,
    %c0_i32_8 = arith.constant 0 : i32
    %9 = arith.cmpi eq, %arg1, %c0_i32_8 : i32
    %10 = arith.extui %9 : i1 to i32
    %c0_i32_9 = arith.constant 0 : i32
    %11 = arith.cmpi ne, %10, %c0_i32_9 : i32
    scf.if %11 {
      %c0_10 = arith.constant 0 : index
      %c0_11 = arith.constant 0 : index
      %12 = vector.load %arg9[%c0_10, %c0_11] : memref<16x32xf32, #tpu.memory_space<vmem>>, vector<16x32xf32>
      %c0_12 = arith.constant 0 : index
      %c0_13 = arith.constant 0 : index
      %13 = vector.load %arg4[%c0_12, %c0_13] : memref<1x32xf32, #tpu.memory_space<vmem>>, vector<1x32xf32>
      %14 = vector.broadcast %13 : vector<1x32xf32> to vector<16x32xf32>
      %15 = arith.addf %12, %14 : vector<16x32xf32>
      %c0_14 = arith.constant 0 : index
      %c0_15 = arith.constant 0 : index
      %16 = vector.load %arg5[%c0_14, %c0_15] : memref<16x32xbf16, #tpu.memory_space<vmem>>, vector<16x32xbf16>
      %17 = arith.extf %16 : vector<16x32xbf16> to vector<16x32xf32>
      %18 = arith.addf %15, %17 : vector<16x32xf32>
      %c0_16 = arith.constant 0 : index
      %c0_17 = arith.constant 0 : index
      %19 = vector.load %arg6[%c0_16, %c0_17] : memref<1x32xf32, #tpu.memory_space<vmem>>, vector<1x32xf32>
      %c0_18 = arith.constant 0 : index
      %c0_19 = arith.constant 0 : index
      %20 = vector.load %arg7[%c0_18, %c0_19] : memref<1x32xf32, #tpu.memory_space<vmem>>, vector<1x32xf32>
      %cst_20 = arith.constant dense<0.000000e+00> : vector<16xf32>
      %21 = vector.multi_reduction <add>, %18, %cst_20 [1] : vector<16x32xf32> to vector<16xf32>
      %22 = vector.shape_cast %21 : vector<16xf32> to vector<16x1xf32>
      %cst_21 = arith.constant 3.200000e+01 : f32
      %23 = vector.broadcast %cst_21 : f32 to vector<16x1xf32>
      %24 = arith.divf %22, %23 : vector<16x1xf32>
      %25 = vector.broadcast %24 : vector<16x1xf32> to vector<16x32xf32>
      %26 = arith.subf %18, %25 : vector<16x32xf32>
      %27 = arith.mulf %26, %26 : vector<16x32xf32>
      %cst_22 = arith.constant dense<0.000000e+00> : vector<16xf32>
      %28 = vector.multi_reduction <add>, %27, %cst_22 [1] : vector<16x32xf32> to vector<16xf32>
      %29 = vector.shape_cast %28 : vector<16xf32> to vector<16x1xf32>
      %cst_23 = arith.constant 3.200000e+01 : f32
      %30 = vector.broadcast %cst_23 : f32 to vector<16x1xf32>
      %31 = arith.divf %29, %30 : vector<16x1xf32>
      %32 = vector.broadcast %24 : vector<16x1xf32> to vector<16x32xf32>
      %33 = arith.subf %18, %32 : vector<16x32xf32>
      %cst_24 = arith.constant 9.99999974E-6 : f32
      %34 = vector.broadcast %cst_24 : f32 to vector<16x1xf32>
      %35 = arith.addf %31, %34 : vector<16x1xf32>
      %36 = math.rsqrt %35 : vector<16x1xf32>
      %37 = vector.broadcast %36 : vector<16x1xf32> to vector<16x32xf32>
      %38 = arith.mulf %33, %37 : vector<16x32xf32>
      %39 = vector.broadcast %19 : vector<1x32xf32> to vector<16x32xf32>
      %40 = arith.mulf %38, %39 : vector<16x32xf32>
      %41 = vector.broadcast %20 : vector<1x32xf32> to vector<16x32xf32>
      %42 = arith.addf %40, %41 : vector<16x32xf32>
      %43 = arith.truncf %42 : vector<16x32xf32> to vector<16x32xbf16>
      %c0_25 = arith.constant 0 : index
      %c0_26 = arith.constant 0 : index
      %44 = vector.load %arg8[%c0_25, %c0_26] : memref<16x32xbf16, #tpu.memory_space<vmem>>, vector<16x32xbf16>
      tpu.vector_store %arg8[%c0_25, %c0_26], %43 {strides = array<i32>} : memref<16x32xbf16, #tpu.memory_space<vmem>>, vector<16x32xbf16>,
    } else {
    }
    return
  }
  func.func @transform_0(%arg0: i32, %arg1: i32) -> (i32, i32) {
    %c0_i32 = arith.constant 0 : i32
    return %arg0, %arg1 : i32, i32
  }
  func.func @transform_1(%arg0: i32, %arg1: i32) -> (i32, i32) {
    %c0_i32 = arith.constant 0 : i32
    %c0_i32_0 = arith.constant 0 : i32
    return %arg1, %c0_i32 : i32, i32
  }
  func.func @transform_2(%arg0: i32, %arg1: i32) -> (i32, i32) {
    %c0_i32 = arith.constant 0 : i32
    %c0_i32_0 = arith.constant 0 : i32
    %c0_i32_1 = arith.constant 0 : i32
    return %c0_i32, %c0_i32_0 : i32, i32
  }
  func.func @transform_3(%arg0: i32, %arg1: i32) -> (i32, i32) {
    %c0_i32 = arith.constant 0 : i32
    %c0_i32_0 = arith.constant 0 : i32
    return %arg0, %c0_i32 : i32, i32
  }
  func.func @transform_4(%arg0: i32, %arg1: i32) -> (i32, i32) {
    %c0_i32 = arith.constant 0 : i32
    %c0_i32_0 = arith.constant 0 : i32
    %c0_i32_1 = arith.constant 0 : i32
    return %c0_i32, %c0_i32_0 : i32, i32
  }
  func.func @transform_5(%arg0: i32, %arg1: i32) -> (i32, i32) {
    %c0_i32 = arith.constant 0 : i32
    %c0_i32_0 = arith.constant 0 : i32
    %c0_i32_1 = arith.constant 0 : i32
    return %c0_i32, %c0_i32_0 : i32, i32
  }
  func.func @transform_6(%arg0: i32, %arg1: i32) -> (i32, i32) {
    %c0_i32 = arith.constant 0 : i32
    %c0_i32_0 = arith.constant 0 : i32
    return %arg0, %c0_i32 : i32, i32
  }
}

module attributes {stable_mosaic.version = 11 : i64} {
  func.func @attention_loop_kernel(%arg0: i32, %arg1: memref<1x8x96xbf16, #tpu.memory_space<vmem>>, %arg2: memref<1x8x32xbf16, #tpu.memory_space<vmem>>) attributes {dimension_semantics = [#tpu.dimension_semantics<parallel>], iteration_bounds = array<i64: 2>, scalar_prefetch = 0 : i64, scratch_operands = 0 : i64, tpu.core_type = #tpu.core_type<tc>, window_params = [{transform_indices = @transform_0, window_bounds = array<i64: 1, 8, 96>}, {transform_indices = @transform_1, window_bounds = array<i64: 1, 8, 32>}]} {
    %0 = tpu.iota {dimensions = array<i32: 0>} : vector<8x8xi32>
    %1 = tpu.iota {dimensions = array<i32: 1>} : vector<8x8xi32>
    %2 = arith.cmpi sle, %1, %0 : vector<8x8xi32>
    %c0 = arith.constant 0 : index
    %c0_0 = arith.constant 0 : index
    %c0_1 = arith.constant 0 : index
    %3 = vector.load %arg1[%c0, %c0_0, %c0_1] : memref<1x8x96xbf16, #tpu.memory_space<vmem>>, vector<1x8x8xbf16>
    %4 = vector.shape_cast %3 : vector<1x8x8xbf16> to vector<8x8xbf16>
    %c0_2 = arith.constant 0 : index
    %c0_3 = arith.constant 0 : index
    %c32 = arith.constant 32 : index
    %5 = vector.load %arg1[%c0_2, %c0_3, %c32] : memref<1x8x96xbf16, #tpu.memory_space<vmem>>, vector<1x8x8xbf16>
    %6 = vector.shape_cast %5 : vector<1x8x8xbf16> to vector<8x8xbf16>
    %c0_4 = arith.constant 0 : index
    %c0_5 = arith.constant 0 : index
    %c64 = arith.constant 64 : index
    %7 = vector.load %arg1[%c0_4, %c0_5, %c64] : memref<1x8x96xbf16, #tpu.memory_space<vmem>>, vector<1x8x8xbf16>
    %8 = vector.shape_cast %7 : vector<1x8x8xbf16> to vector<8x8xbf16>
    %cst = arith.constant dense<0.000000e+00> : vector<8x8xf32>
    %9 = tpu.matmul %4, %6, %cst {dimension_numbers = #tpu.dot_dimension_numbers<[1], [1], [0], [0], [0, 0, 1, 0], [], []>} : vector<8x8xbf16>, vector<8x8xbf16>, vector<8x8xf32> -> vector<8x8xf32>
    %cst_6 = arith.constant 0.353553385 : f32
    %10 = vector.broadcast %cst_6 : f32 to vector<8x8xf32>
    %11 = arith.mulf %9, %10 : vector<8x8xf32>
    %cst_7 = arith.constant -1.000000e+09 : f32
    %12 = vector.broadcast %cst_7 : f32 to vector<8x8xf32>
    %13 = arith.select %2, %11, %12 : vector<8x8xi1>, vector<8x8xf32>
    %cst_8 = arith.constant dense<0xFF800000> : vector<8xf32>
    %14 = vector.multi_reduction <maximumf>, %13, %cst_8 [1] : vector<8x8xf32> to vector<8xf32>
    %15 = vector.shape_cast %14 : vector<8xf32> to vector<8x1xf32>
    %16 = vector.broadcast %15 : vector<8x1xf32> to vector<8x8xf32>
    %17 = arith.subf %13, %16 : vector<8x8xf32>
    %18 = math.exp %17 : vector<8x8xf32>
    %cst_9 = arith.constant dense<0.000000e+00> : vector<8xf32>
    %19 = vector.multi_reduction <add>, %18, %cst_9 [1] : vector<8x8xf32> to vector<8xf32>
    %20 = vector.shape_cast %19 : vector<8xf32> to vector<8x1xf32>
    %21 = tpu.reciprocal %20 {approx = true} : vector<8x1xf32> -> vector<8x1xf32>
    %22 = vector.broadcast %21 : vector<8x1xf32> to vector<8x8xf32>
    %23 = arith.mulf %18, %22 : vector<8x8xf32>
    %24 = arith.truncf %23 : vector<8x8xf32> to vector<8x8xbf16>
    %cst_10 = arith.constant dense<0.000000e+00> : vector<8x8xf32>
    %25 = tpu.matmul %24, %8, %cst_10 {dimension_numbers = #tpu.dot_dimension_numbers<[1], [0], [0], [1], [0, 0, 1, 1], [], []>} : vector<8x8xbf16>, vector<8x8xbf16>, vector<8x8xf32> -> vector<8x8xf32>
    %26 = arith.truncf %25 : vector<8x8xf32> to vector<8x8xbf16>
    %c0_11 = arith.constant 0 : index
    %c0_12 = arith.constant 0 : index
    %c0_13 = arith.constant 0 : index
    %27 = vector.load %arg2[%c0_11, %c0_12, %c0_13] : memref<1x8x32xbf16, #tpu.memory_space<vmem>>, vector<1x8x8xbf16>
    %28 = vector.shape_cast %27 : vector<1x8x8xbf16> to vector<8x8xbf16>
    %29 = vector.shape_cast %26 : vector<8x8xbf16> to vector<1x8x8xbf16>
    tpu.vector_store %arg2[%c0_11, %c0_12, %c0_13], %29 {strides = array<i32>} : memref<1x8x32xbf16, #tpu.memory_space<vmem>>, vector<1x8x8xbf16>,
    %c0_14 = arith.constant 0 : index
    %c0_15 = arith.constant 0 : index
    %c8 = arith.constant 8 : index
    %30 = vector.load %arg1[%c0_14, %c0_15, %c8] : memref<1x8x96xbf16, #tpu.memory_space<vmem>>, vector<1x8x8xbf16>
    %31 = vector.shape_cast %30 : vector<1x8x8xbf16> to vector<8x8xbf16>
    %c0_16 = arith.constant 0 : index
    %c0_17 = arith.constant 0 : index
    %c40 = arith.constant 40 : index
    %32 = vector.load %arg1[%c0_16, %c0_17, %c40] : memref<1x8x96xbf16, #tpu.memory_space<vmem>>, vector<1x8x8xbf16>
    %33 = vector.shape_cast %32 : vector<1x8x8xbf16> to vector<8x8xbf16>
    %c0_18 = arith.constant 0 : index
    %c0_19 = arith.constant 0 : index
    %c72 = arith.constant 72 : index
    %34 = vector.load %arg1[%c0_18, %c0_19, %c72] : memref<1x8x96xbf16, #tpu.memory_space<vmem>>, vector<1x8x8xbf16>
    %35 = vector.shape_cast %34 : vector<1x8x8xbf16> to vector<8x8xbf16>
    %cst_20 = arith.constant dense<0.000000e+00> : vector<8x8xf32>
    %36 = tpu.matmul %31, %33, %cst_20 {dimension_numbers = #tpu.dot_dimension_numbers<[1], [1], [0], [0], [0, 0, 1, 0], [], []>} : vector<8x8xbf16>, vector<8x8xbf16>, vector<8x8xf32> -> vector<8x8xf32>
    %cst_21 = arith.constant 0.353553385 : f32
    %37 = vector.broadcast %cst_21 : f32 to vector<8x8xf32>
    %38 = arith.mulf %36, %37 : vector<8x8xf32>
    %cst_22 = arith.constant -1.000000e+09 : f32
    %39 = vector.broadcast %cst_22 : f32 to vector<8x8xf32>
    %40 = arith.select %2, %38, %39 : vector<8x8xi1>, vector<8x8xf32>
    %cst_23 = arith.constant dense<0xFF800000> : vector<8xf32>
    %41 = vector.multi_reduction <maximumf>, %40, %cst_23 [1] : vector<8x8xf32> to vector<8xf32>
    %42 = vector.shape_cast %41 : vector<8xf32> to vector<8x1xf32>
    %43 = vector.broadcast %42 : vector<8x1xf32> to vector<8x8xf32>
    %44 = arith.subf %40, %43 : vector<8x8xf32>
    %45 = math.exp %44 : vector<8x8xf32>
    %cst_24 = arith.constant dense<0.000000e+00> : vector<8xf32>
    %46 = vector.multi_reduction <add>, %45, %cst_24 [1] : vector<8x8xf32> to vector<8xf32>
    %47 = vector.shape_cast %46 : vector<8xf32> to vector<8x1xf32>
    %48 = tpu.reciprocal %47 {approx = true} : vector<8x1xf32> -> vector<8x1xf32>
    %49 = vector.broadcast %48 : vector<8x1xf32> to vector<8x8xf32>
    %50 = arith.mulf %45, %49 : vector<8x8xf32>
    %51 = arith.truncf %50 : vector<8x8xf32> to vector<8x8xbf16>
    %cst_25 = arith.constant dense<0.000000e+00> : vector<8x8xf32>
    %52 = tpu.matmul %51, %35, %cst_25 {dimension_numbers = #tpu.dot_dimension_numbers<[1], [0], [0], [1], [0, 0, 1, 1], [], []>} : vector<8x8xbf16>, vector<8x8xbf16>, vector<8x8xf32> -> vector<8x8xf32>
    %53 = arith.truncf %52 : vector<8x8xf32> to vector<8x8xbf16>
    %c0_26 = arith.constant 0 : index
    %c0_27 = arith.constant 0 : index
    %c8_28 = arith.constant 8 : index
    %54 = vector.load %arg2[%c0_26, %c0_27, %c8_28] : memref<1x8x32xbf16, #tpu.memory_space<vmem>>, vector<1x8x8xbf16>
    %55 = vector.shape_cast %54 : vector<1x8x8xbf16> to vector<8x8xbf16>
    %56 = vector.shape_cast %53 : vector<8x8xbf16> to vector<1x8x8xbf16>
    tpu.vector_store %arg2[%c0_26, %c0_27, %c8_28], %56 {strides = array<i32>} : memref<1x8x32xbf16, #tpu.memory_space<vmem>>, vector<1x8x8xbf16>,
    %c0_29 = arith.constant 0 : index
    %c0_30 = arith.constant 0 : index
    %c16 = arith.constant 16 : index
    %57 = vector.load %arg1[%c0_29, %c0_30, %c16] : memref<1x8x96xbf16, #tpu.memory_space<vmem>>, vector<1x8x8xbf16>
    %58 = vector.shape_cast %57 : vector<1x8x8xbf16> to vector<8x8xbf16>
    %c0_31 = arith.constant 0 : index
    %c0_32 = arith.constant 0 : index
    %c48 = arith.constant 48 : index
    %59 = vector.load %arg1[%c0_31, %c0_32, %c48] : memref<1x8x96xbf16, #tpu.memory_space<vmem>>, vector<1x8x8xbf16>
    %60 = vector.shape_cast %59 : vector<1x8x8xbf16> to vector<8x8xbf16>
    %c0_33 = arith.constant 0 : index
    %c0_34 = arith.constant 0 : index
    %c80 = arith.constant 80 : index
    %61 = vector.load %arg1[%c0_33, %c0_34, %c80] : memref<1x8x96xbf16, #tpu.memory_space<vmem>>, vector<1x8x8xbf16>
    %62 = vector.shape_cast %61 : vector<1x8x8xbf16> to vector<8x8xbf16>
    %cst_35 = arith.constant dense<0.000000e+00> : vector<8x8xf32>
    %63 = tpu.matmul %58, %60, %cst_35 {dimension_numbers = #tpu.dot_dimension_numbers<[1], [1], [0], [0], [0, 0, 1, 0], [], []>} : vector<8x8xbf16>, vector<8x8xbf16>, vector<8x8xf32> -> vector<8x8xf32>
    %cst_36 = arith.constant 0.353553385 : f32
    %64 = vector.broadcast %cst_36 : f32 to vector<8x8xf32>
    %65 = arith.mulf %63, %64 : vector<8x8xf32>
    %cst_37 = arith.constant -1.000000e+09 : f32
    %66 = vector.broadcast %cst_37 : f32 to vector<8x8xf32>
    %67 = arith.select %2, %65, %66 : vector<8x8xi1>, vector<8x8xf32>
    %cst_38 = arith.constant dense<0xFF800000> : vector<8xf32>
    %68 = vector.multi_reduction <maximumf>, %67, %cst_38 [1] : vector<8x8xf32> to vector<8xf32>
    %69 = vector.shape_cast %68 : vector<8xf32> to vector<8x1xf32>
    %70 = vector.broadcast %69 : vector<8x1xf32> to vector<8x8xf32>
    %71 = arith.subf %67, %70 : vector<8x8xf32>
    %72 = math.exp %71 : vector<8x8xf32>
    %cst_39 = arith.constant dense<0.000000e+00> : vector<8xf32>
    %73 = vector.multi_reduction <add>, %72, %cst_39 [1] : vector<8x8xf32> to vector<8xf32>
    %74 = vector.shape_cast %73 : vector<8xf32> to vector<8x1xf32>
    %75 = tpu.reciprocal %74 {approx = true} : vector<8x1xf32> -> vector<8x1xf32>
    %76 = vector.broadcast %75 : vector<8x1xf32> to vector<8x8xf32>
    %77 = arith.mulf %72, %76 : vector<8x8xf32>
    %78 = arith.truncf %77 : vector<8x8xf32> to vector<8x8xbf16>
    %cst_40 = arith.constant dense<0.000000e+00> : vector<8x8xf32>
    %79 = tpu.matmul %78, %62, %cst_40 {dimension_numbers = #tpu.dot_dimension_numbers<[1], [0], [0], [1], [0, 0, 1, 1], [], []>} : vector<8x8xbf16>, vector<8x8xbf16>, vector<8x8xf32> -> vector<8x8xf32>
    %80 = arith.truncf %79 : vector<8x8xf32> to vector<8x8xbf16>
    %c0_41 = arith.constant 0 : index
    %c0_42 = arith.constant 0 : index
    %c16_43 = arith.constant 16 : index
    %81 = vector.load %arg2[%c0_41, %c0_42, %c16_43] : memref<1x8x32xbf16, #tpu.memory_space<vmem>>, vector<1x8x8xbf16>
    %82 = vector.shape_cast %81 : vector<1x8x8xbf16> to vector<8x8xbf16>
    %83 = vector.shape_cast %80 : vector<8x8xbf16> to vector<1x8x8xbf16>
    tpu.vector_store %arg2[%c0_41, %c0_42, %c16_43], %83 {strides = array<i32>} : memref<1x8x32xbf16, #tpu.memory_space<vmem>>, vector<1x8x8xbf16>,
    %c0_44 = arith.constant 0 : index
    %c0_45 = arith.constant 0 : index
    %c24 = arith.constant 24 : index
    %84 = vector.load %arg1[%c0_44, %c0_45, %c24] : memref<1x8x96xbf16, #tpu.memory_space<vmem>>, vector<1x8x8xbf16>
    %85 = vector.shape_cast %84 : vector<1x8x8xbf16> to vector<8x8xbf16>
    %c0_46 = arith.constant 0 : index
    %c0_47 = arith.constant 0 : index
    %c56 = arith.constant 56 : index
    %86 = vector.load %arg1[%c0_46, %c0_47, %c56] : memref<1x8x96xbf16, #tpu.memory_space<vmem>>, vector<1x8x8xbf16>
    %87 = vector.shape_cast %86 : vector<1x8x8xbf16> to vector<8x8xbf16>
    %c0_48 = arith.constant 0 : index
    %c0_49 = arith.constant 0 : index
    %c88 = arith.constant 88 : index
    %88 = vector.load %arg1[%c0_48, %c0_49, %c88] : memref<1x8x96xbf16, #tpu.memory_space<vmem>>, vector<1x8x8xbf16>
    %89 = vector.shape_cast %88 : vector<1x8x8xbf16> to vector<8x8xbf16>
    %cst_50 = arith.constant dense<0.000000e+00> : vector<8x8xf32>
    %90 = tpu.matmul %85, %87, %cst_50 {dimension_numbers = #tpu.dot_dimension_numbers<[1], [1], [0], [0], [0, 0, 1, 0], [], []>} : vector<8x8xbf16>, vector<8x8xbf16>, vector<8x8xf32> -> vector<8x8xf32>
    %cst_51 = arith.constant 0.353553385 : f32
    %91 = vector.broadcast %cst_51 : f32 to vector<8x8xf32>
    %92 = arith.mulf %90, %91 : vector<8x8xf32>
    %cst_52 = arith.constant -1.000000e+09 : f32
    %93 = vector.broadcast %cst_52 : f32 to vector<8x8xf32>
    %94 = arith.select %2, %92, %93 : vector<8x8xi1>, vector<8x8xf32>
    %cst_53 = arith.constant dense<0xFF800000> : vector<8xf32>
    %95 = vector.multi_reduction <maximumf>, %94, %cst_53 [1] : vector<8x8xf32> to vector<8xf32>
    %96 = vector.shape_cast %95 : vector<8xf32> to vector<8x1xf32>
    %97 = vector.broadcast %96 : vector<8x1xf32> to vector<8x8xf32>
    %98 = arith.subf %94, %97 : vector<8x8xf32>
    %99 = math.exp %98 : vector<8x8xf32>
    %cst_54 = arith.constant dense<0.000000e+00> : vector<8xf32>
    %100 = vector.multi_reduction <add>, %99, %cst_54 [1] : vector<8x8xf32> to vector<8xf32>
    %101 = vector.shape_cast %100 : vector<8xf32> to vector<8x1xf32>
    %102 = tpu.reciprocal %101 {approx = true} : vector<8x1xf32> -> vector<8x1xf32>
    %103 = vector.broadcast %102 : vector<8x1xf32> to vector<8x8xf32>
    %104 = arith.mulf %99, %103 : vector<8x8xf32>
    %105 = arith.truncf %104 : vector<8x8xf32> to vector<8x8xbf16>
    %cst_55 = arith.constant dense<0.000000e+00> : vector<8x8xf32>
    %106 = tpu.matmul %105, %89, %cst_55 {dimension_numbers = #tpu.dot_dimension_numbers<[1], [0], [0], [1], [0, 0, 1, 1], [], []>} : vector<8x8xbf16>, vector<8x8xbf16>, vector<8x8xf32> -> vector<8x8xf32>
    %107 = arith.truncf %106 : vector<8x8xf32> to vector<8x8xbf16>
    %c0_56 = arith.constant 0 : index
    %c0_57 = arith.constant 0 : index
    %c24_58 = arith.constant 24 : index
    %108 = vector.load %arg2[%c0_56, %c0_57, %c24_58] : memref<1x8x32xbf16, #tpu.memory_space<vmem>>, vector<1x8x8xbf16>
    %109 = vector.shape_cast %108 : vector<1x8x8xbf16> to vector<8x8xbf16>
    %110 = vector.shape_cast %107 : vector<8x8xbf16> to vector<1x8x8xbf16>
    tpu.vector_store %arg2[%c0_56, %c0_57, %c24_58], %110 {strides = array<i32>} : memref<1x8x32xbf16, #tpu.memory_space<vmem>>, vector<1x8x8xbf16>,
    return
  }
  func.func @transform_0(%arg0: i32) -> (i32, i32, i32) {
    %c0_i32 = arith.constant 0 : i32
    %c0_i32_0 = arith.constant 0 : i32
    %c0_i32_1 = arith.constant 0 : i32
    return %arg0, %c0_i32, %c0_i32_0 : i32, i32, i32
  }
  func.func @transform_1(%arg0: i32) -> (i32, i32, i32) {
    %c0_i32 = arith.constant 0 : i32
    %c0_i32_0 = arith.constant 0 : i32
    %c0_i32_1 = arith.constant 0 : i32
    return %arg0, %c0_i32, %c0_i32_0 : i32, i32, i32
  }
}

module attributes {stable_mosaic.version = 11 : i64} {
  func.func @layernorm_kernel(%arg0: i32, %arg1: memref<16x32xbf16, #tpu.memory_space<vmem>>, %arg2: memref<1x32xf32, #tpu.memory_space<vmem>>, %arg3: memref<1x32xf32, #tpu.memory_space<vmem>>, %arg4: memref<16x32xbf16, #tpu.memory_space<vmem>>) attributes {dimension_semantics = [#tpu.dimension_semantics<parallel>], iteration_bounds = array<i64: 1>, scalar_prefetch = 0 : i64, scratch_operands = 0 : i64, tpu.core_type = #tpu.core_type<tc>, window_params = [{transform_indices = @transform_0, window_bounds = array<i64: 16, 32>}, {pipeline_mode = #tpu.pipeline_mode<synchronous>, transform_indices = @transform_1, window_bounds = array<i64: 1, 32>}, {pipeline_mode = #tpu.pipeline_mode<synchronous>, transform_indices = @transform_2, window_bounds = array<i64: 1, 32>}, {transform_indices = @transform_3, window_bounds = array<i64: 16, 32>}]} {
    %c0 = arith.constant 0 : index
    %c0_0 = arith.constant 0 : index
    %0 = vector.load %arg1[%c0, %c0_0] : memref<16x32xbf16, #tpu.memory_space<vmem>>, vector<16x32xbf16>
    %1 = arith.extf %0 : vector<16x32xbf16> to vector<16x32xf32>
    %c0_1 = arith.constant 0 : index
    %c0_2 = arith.constant 0 : index
    %2 = vector.load %arg2[%c0_1, %c0_2] : memref<1x32xf32, #tpu.memory_space<vmem>>, vector<1x32xf32>
    %c0_3 = arith.constant 0 : index
    %c0_4 = arith.constant 0 : index
    %3 = vector.load %arg3[%c0_3, %c0_4] : memref<1x32xf32, #tpu.memory_space<vmem>>, vector<1x32xf32>
    %cst = arith.constant dense<0.000000e+00> : vector<16xf32>
    %4 = vector.multi_reduction <add>, %1, %cst [1] : vector<16x32xf32> to vector<16xf32>
    %5 = vector.shape_cast %4 : vector<16xf32> to vector<16x1xf32>
    %cst_5 = arith.constant 3.200000e+01 : f32
    %6 = vector.broadcast %cst_5 : f32 to vector<16x1xf32>
    %7 = arith.divf %5, %6 : vector<16x1xf32>
    %8 = vector.broadcast %7 : vector<16x1xf32> to vector<16x32xf32>
    %9 = arith.subf %1, %8 : vector<16x32xf32>
    %10 = arith.mulf %9, %9 : vector<16x32xf32>
    %cst_6 = arith.constant dense<0.000000e+00> : vector<16xf32>
    %11 = vector.multi_reduction <add>, %10, %cst_6 [1] : vector<16x32xf32> to vector<16xf32>
    %12 = vector.shape_cast %11 : vector<16xf32> to vector<16x1xf32>
    %cst_7 = arith.constant 3.200000e+01 : f32
    %13 = vector.broadcast %cst_7 : f32 to vector<16x1xf32>
    %14 = arith.divf %12, %13 : vector<16x1xf32>
    %15 = vector.broadcast %7 : vector<16x1xf32> to vector<16x32xf32>
    %16 = arith.subf %1, %15 : vector<16x32xf32>
    %cst_8 = arith.constant 9.99999974E-6 : f32
    %17 = vector.broadcast %cst_8 : f32 to vector<16x1xf32>
    %18 = arith.addf %14, %17 : vector<16x1xf32>
    %19 = math.rsqrt %18 : vector<16x1xf32>
    %20 = vector.broadcast %19 : vector<16x1xf32> to vector<16x32xf32>
    %21 = arith.mulf %16, %20 : vector<16x32xf32>
    %22 = vector.broadcast %2 : vector<1x32xf32> to vector<16x32xf32>
    %23 = arith.mulf %21, %22 : vector<16x32xf32>
    %24 = vector.broadcast %3 : vector<1x32xf32> to vector<16x32xf32>
    %25 = arith.addf %23, %24 : vector<16x32xf32>
    %26 = arith.truncf %25 : vector<16x32xf32> to vector<16x32xbf16>
    %c0_9 = arith.constant 0 : index
    %c0_10 = arith.constant 0 : index
    %27 = vector.load %arg4[%c0_9, %c0_10] : memref<16x32xbf16, #tpu.memory_space<vmem>>, vector<16x32xbf16>
    tpu.vector_store %arg4[%c0_9, %c0_10], %26 {strides = array<i32>} : memref<16x32xbf16, #tpu.memory_space<vmem>>, vector<16x32xbf16>,
    return
  }
  func.func @transform_0(%arg0: i32) -> (i32, i32) {
    %c0_i32 = arith.constant 0 : i32
    %c0_i32_0 = arith.constant 0 : i32
    return %arg0, %c0_i32 : i32, i32
  }
  func.func @transform_1(%arg0: i32) -> (i32, i32) {
    %c0_i32 = arith.constant 0 : i32
    %c0_i32_0 = arith.constant 0 : i32
    %c0_i32_1 = arith.constant 0 : i32
    return %c0_i32, %c0_i32_0 : i32, i32
  }
  func.func @transform_2(%arg0: i32) -> (i32, i32) {
    %c0_i32 = arith.constant 0 : i32
    %c0_i32_0 = arith.constant 0 : i32
    %c0_i32_1 = arith.constant 0 : i32
    return %c0_i32, %c0_i32_0 : i32, i32
  }
  func.func @transform_3(%arg0: i32) -> (i32, i32) {
    %c0_i32 = arith.constant 0 : i32
    %c0_i32_0 = arith.constant 0 : i32
    return %arg0, %c0_i32 : i32, i32
  }
}

module attributes {stable_mosaic.version = 11 : i64} {
  func.func @matmul_add_ln_kernel(%arg0: i32, %arg1: i32, %arg2: memref<16x64xbf16, #tpu.memory_space<vmem>>, %arg3: memref<64x32xbf16, #tpu.memory_space<vmem>>, %arg4: memref<1x32xf32, #tpu.memory_space<vmem>>, %arg5: memref<16x32xbf16, #tpu.memory_space<vmem>>, %arg6: memref<1x32xf32, #tpu.memory_space<vmem>>, %arg7: memref<1x32xf32, #tpu.memory_space<vmem>>, %arg8: memref<16x32xbf16, #tpu.memory_space<vmem>>, %arg9: memref<16x32xf32, #tpu.memory_space<vmem>>) attributes {dimension_semantics = [#tpu.dimension_semantics<parallel>, #tpu.dimension_semantics<arbitrary>], iteration_bounds = array<i64: 1, 1>, scalar_prefetch = 0 : i64, scratch_operands = 1 : i64, tpu.core_type = #tpu.core_type<tc>, window_params = [{transform_indices = @transform_0, window_bounds = array<i64: 16, 64>}, {transform_indices = @transform_1, window_bounds = array<i64: 64, 32>}, {pipeline_mode = #tpu.pipeline_mode<synchronous>, transform_indices = @transform_2, window_bounds = array<i64: 1, 32>}, {transform_indices = @transform_3, window_bounds = array<i64: 16, 32>}, {pipeline_mode = #tpu.pipeline_mode<synchronous>, transform_indices = @transform_4, window_bounds = array<i64: 1, 32>}, {pipeline_mode = #tpu.pipeline_mode<synchronous>, transform_indices = @transform_5, window_bounds = array<i64: 1, 32>}, {transform_indices = @transform_6, window_bounds = array<i64: 16, 32>}]} {
    %c0_i32 = arith.constant 0 : i32
    %0 = arith.cmpi eq, %arg1, %c0_i32 : i32
    %1 = arith.extui %0 : i1 to i32
    %c0_i32_0 = arith.constant 0 : i32
    %2 = arith.cmpi ne, %1, %c0_i32_0 : i32
    scf.if %2 {
      %cst_10 = arith.constant 0.000000e+00 : f32
      %12 = vector.broadcast %cst_10 : f32 to vector<16x32xf32>
      %c0_11 = arith.constant 0 : index
      %c0_12 = arith.constant 0 : index
      %13 = vector.load %arg9[%c0_11, %c0_12] : memref<16x32xf32, #tpu.memory_space<vmem>>, vector<16x32xf32>
      tpu.vector_store %arg9[%c0_11, %c0_12], %12 {strides = array<i32>} : memref<16x32xf32, #tpu.memory_space<vmem>>, vector<16x32xf32>,
    } else {
    }
    %c0 = arith.constant 0 : index
    %c0_1 = arith.constant 0 : index
    %3 = vector.load %arg9[%c0, %c0_1] : memref<16x32xf32, #tpu.memory_space<vmem>>, vector<16x32xf32>
    %c0_2 = arith.constant 0 : index
    %c0_3 = arith.constant 0 : index
    %4 = vector.load %arg2[%c0_2, %c0_3] : memref<16x64xbf16, #tpu.memory_space<vmem>>, vector<16x64xbf16>
    %c0_4 = arith.constant 0 : index
    %c0_5 = arith.constant 0 : index
    %5 = vector.load %arg3[%c0_4, %c0_5] : memref<64x32xbf16, #tpu.memory_space<vmem>>, vector<64x32xbf16>
    %cst = arith.constant dense<0.000000e+00> : vector<16x32xf32>
    %6 = tpu.matmul %4, %5, %cst {dimension_numbers = #tpu.dot_dimension_numbers<[1], [0], [0], [1], [0, 0, 1, 1], [], []>} : vector<16x64xbf16>, vector<64x32xbf16>, vector<16x32xf32> -> vector<16x32xf32>
    %7 = arith.addf %3, %6 : vector<16x32xf32>
    %c0_6 = arith.constant 0 : index
    %c0_7 = arith.constant 0 : index
    %8 = vector.load %arg9[%c0_6, %c0_7] : memref<16x32xf32, #tpu.memory_space<vmem>>, vector<16x32xf32>
    tpu.vector_store %arg9[%c0_6, %c0_7], %7 {strides = array<i32>} : memref<16x32xf32, #tpu.memory_space<vmem>>, vector<16x32xf32>,
    %c0_i32_8 = arith.constant 0 : i32
    %9 = arith.cmpi eq, %arg1, %c0_i32_8 : i32
    %10 = arith.extui %9 : i1 to i32
    %c0_i32_9 = arith.constant 0 : i32
    %11 = arith.cmpi ne, %10, %c0_i32_9 : i32
    scf.if %11 {
      %c0_10 = arith.constant 0 : index
      %c0_11 = arith.constant 0 : index
      %12 = vector.load %arg9[%c0_10, %c0_11] : memref<16x32xf32, #tpu.memory_space<vmem>>, vector<16x32xf32>
      %c0_12 = arith.constant 0 : index
      %c0_13 = arith.constant 0 : index
      %13 = vector.load %arg4[%c0_12, %c0_13] : memref<1x32xf32, #tpu.memory_space<vmem>>, vector<1x32xf32>
      %14 = vector.broadcast %13 : vector<1x32xf32> to vector<16x32xf32>
      %15 = arith.addf %12, %14 : vector<16x32xf32>
      %c0_14 = arith.constant 0 : index
      %c0_15 = arith.constant 0 : index
      %16 = vector.load %arg5[%c0_14, %c0_15] : memref<16x32xbf16, #tpu.memory_space<vmem>>, vector<16x32xbf16>
      %17 = arith.extf %16 : vector<16x32xbf16> to vector<16x32xf32>
      %18 = arith.addf %15, %17 : vector<16x32xf32>
      %c0_16 = arith.constant 0 : index
      %c0_17 = arith.constant 0 : index
      %19 = vector.load %arg6[%c0_16, %c0_17] : memref<1x32xf32, #tpu.memory_space<vmem>>, vector<1x32xf32>
      %c0_18 = arith.constant 0 : index
      %c0_19 = arith.constant 0 : index
      %20 = vector.load %arg7[%c0_18, %c0_19] : memref<1x32xf32, #tpu.memory_space<vmem>>, vector<1x32xf32>
      %cst_20 = arith.constant dense<0.000000e+00> : vector<16xf32>
      %21 = vector.multi_reduction <add>, %18, %cst_20 [1] : vector<16x32xf32> to vector<16xf32>
      %22 = vector.shape_cast %21 : vector<16xf32> to vector<16x1xf32>
      %cst_21 = arith.constant 3.200000e+01 : f32
      %23 = vector.broadcast %cst_21 : f32 to vector<16x1xf32>
      %24 = arith.divf %22, %23 : vector<16x1xf32>
      %25 = vector.broadcast %24 : vector<16x1xf32> to vector<16x32xf32>
      %26 = arith.subf %18, %25 : vector<16x32xf32>
      %27 = arith.mulf %26, %26 : vector<16x32xf32>
      %cst_22 = arith.constant dense<0.000000e+00> : vector<16xf32>
      %28 = vector.multi_reduction <add>, %27, %cst_22 [1] : vector<16x32xf32> to vector<16xf32>
      %29 = vector.shape_cast %28 : vector<16xf32> to vector<16x1xf32>
      %cst_23 = arith.constant 3.200000e+01 : f32
      %30 = vector.broadcast %cst_23 : f32 to vector<16x1xf32>
      %31 = arith.divf %29, %30 : vector<16x1xf32>
      %32 = vector.broadcast %24 : vector<16x1xf32> to vector<16x32xf32>
      %33 = arith.subf %18, %32 : vector<16x32xf32>
      %cst_24 = arith.constant 9.99999974E-6 : f32
      %34 = vector.broadcast %cst_24 : f32 to vector<16x1xf32>
      %35 = arith.addf %31, %34 : vector<16x1xf32>
      %36 = math.rsqrt %35 : vector<16x1xf32>
      %37 = vector.broadcast %36 : vector<16x1xf32> to vector<16x32xf32>
      %38 = arith.mulf %33, %37 : vector<16x32xf32>
      %39 = vector.broadcast %19 : vector<1x32xf32> to vector<16x32xf32>
      %40 = arith.mulf %38, %39 : vector<16x32xf32>
      %41 = vector.broadcast %20 : vector<1x32xf32> to vector<16x32xf32>
      %42 = arith.addf %40, %41 : vector<16x32xf32>
      %43 = arith.truncf %42 : vector<16x32xf32> to vector<16x32xbf16>
      %c0_25 = arith.constant 0 : index
      %c0_26 = arith.constant 0 : index
      %44 = vector.load %arg8[%c0_25, %c0_26] : memref<16x32xbf16, #tpu.memory_space<vmem>>, vector<16x32xbf16>
      tpu.vector_store %arg8[%c0_25, %c0_26], %43 {strides = array<i32>} : memref<16x32xbf16, #tpu.memory_space<vmem>>, vector<16x32xbf16>,
    } else {
    }
    return
  }
  func.func @transform_0(%arg0: i32, %arg1: i32) -> (i32, i32) {
    %c0_i32 = arith.constant 0 : i32
    return %arg0, %arg1 : i32, i32
  }
  func.func @transform_1(%arg0: i32, %arg1: i32) -> (i32, i32) {
    %c0_i32 = arith.constant 0 : i32
    %c0_i32_0 = arith.constant 0 : i32
    return %arg1, %c0_i32 : i32, i32
  }
  func.func @transform_2(%arg0: i32, %arg1: i32) -> (i32, i32) {
    %c0_i32 = arith.constant 0 : i32
    %c0_i32_0 = arith.constant 0 : i32
    %c0_i32_1 = arith.constant 0 : i32
    return %c0_i32, %c0_i32_0 : i32, i32
  }
  func.func @transform_3(%arg0: i32, %arg1: i32) -> (i32, i32) {
    %c0_i32 = arith.constant 0 : i32
    %c0_i32_0 = arith.constant 0 : i32
    return %arg0, %c0_i32 : i32, i32
  }
  func.func @transform_4(%arg0: i32, %arg1: i32) -> (i32, i32) {
    %c0_i32 = arith.constant 0 : i32
    %c0_i32_0 = arith.constant 0 : i32
    %c0_i32_1 = arith.constant 0 : i32
    return %c0_i32, %c0_i32_0 : i32, i32
  }
  func.func @transform_5(%arg0: i32, %arg1: i32) -> (i32, i32) {
    %c0_i32 = arith.constant 0 : i32
    %c0_i32_0 = arith.constant 0 : i32
    %c0_i32_1 = arith.constant 0 : i32
    return %c0_i32, %c0_i32_0 : i32, i32
  }
  func.func @transform_6(%arg0: i32, %arg1: i32) -> (i32, i32) {
    %c0_i32 = arith.constant 0 : i32
    %c0_i32_0 = arith.constant 0 : i32
    return %arg0, %c0_i32 : i32, i32
  }
}

module attributes {stable_mosaic.version = 11 : i64} {
  func.func @matmul_kernel(%arg0: i32, %arg1: i32, %arg2: i32, %arg3: memref<16x32xbf16, #tpu.memory_space<vmem>>, %arg4: memref<32x128xbf16, #tpu.memory_space<vmem>>, %arg5: memref<1x128xf32, #tpu.memory_space<vmem>>, %arg6: memref<16x128xf32, #tpu.memory_space<vmem>>, %arg7: memref<16x128xf32, #tpu.memory_space<vmem>>) attributes {dimension_semantics = [#tpu.dimension_semantics<parallel>, #tpu.dimension_semantics<parallel>, #tpu.dimension_semantics<arbitrary>], iteration_bounds = array<i64: 1, 1, 1>, scalar_prefetch = 0 : i64, scratch_operands = 1 : i64, tpu.core_type = #tpu.core_type<tc>, window_params = [{transform_indices = @transform_0, window_bounds = array<i64: 16, 32>}, {transform_indices = @transform_1, window_bounds = array<i64: 32, 128>}, {transform_indices = @transform_2, window_bounds = array<i64: 1, 128>}, {transform_indices = @transform_3, window_bounds = array<i64: 16, 128>}]} {
    %c0_i32 = arith.constant 0 : i32
    %0 = arith.cmpi eq, %arg2, %c0_i32 : i32
    %1 = arith.extui %0 : i1 to i32
    %c0_i32_0 = arith.constant 0 : i32
    %2 = arith.cmpi ne, %1, %c0_i32_0 : i32
    scf.if %2 {
      %cst_10 = arith.constant 0.000000e+00 : f32
      %12 = vector.broadcast %cst_10 : f32 to vector<16x128xf32>
      %c0_11 = arith.constant 0 : index
      %c0_12 = arith.constant 0 : index
      %13 = vector.load %arg7[%c0_11, %c0_12] : memref<16x128xf32, #tpu.memory_space<vmem>>, vector<16x128xf32>
      tpu.vector_store %arg7[%c0_11, %c0_12], %12 {strides = array<i32>} : memref<16x128xf32, #tpu.memory_space<vmem>>, vector<16x128xf32>,
    } else {
    }
    %c0 = arith.constant 0 : index
    %c0_1 = arith.constant 0 : index
    %3 = vector.load %arg7[%c0, %c0_1] : memref<16x128xf32, #tpu.memory_space<vmem>>, vector<16x128xf32>
    %c0_2 = arith.constant 0 : index
    %c0_3 = arith.constant 0 : index
    %4 = vector.load %arg3[%c0_2, %c0_3] : memref<16x32xbf16, #tpu.memory_space<vmem>>, vector<16x32xbf16>
    %c0_4 = arith.constant 0 : index
    %c0_5 = arith.constant 0 : index
    %5 = vector.load %arg4[%c0_4, %c0_5] : memref<32x128xbf16, #tpu.memory_space<vmem>>, vector<32x128xbf16>
    %cst = arith.constant dense<0.000000e+00> : vector<16x128xf32>
    %6 = tpu.matmul %4, %5, %cst {dimension_numbers = #tpu.dot_dimension_numbers<[1], [0], [0], [1], [0, 0, 1, 1], [], []>} : vector<16x32xbf16>, vector<32x128xbf16>, vector<16x128xf32> -> vector<16x128xf32>
    %7 = arith.addf %3, %6 : vector<16x128xf32>
    %c0_6 = arith.constant 0 : index
    %c0_7 = arith.constant 0 : index
    %8 = vector.load %arg7[%c0_6, %c0_7] : memref<16x128xf32, #tpu.memory_space<vmem>>, vector<16x128xf32>
    tpu.vector_store %arg7[%c0_6, %c0_7], %7 {strides = array<i32>} : memref<16x128xf32, #tpu.memory_space<vmem>>, vector<16x128xf32>,
    %c0_i32_8 = arith.constant 0 : i32
    %9 = arith.cmpi eq, %arg2, %c0_i32_8 : i32
    %10 = arith.extui %9 : i1 to i32
    %c0_i32_9 = arith.constant 0 : i32
    %11 = arith.cmpi ne, %10, %c0_i32_9 : i32
    scf.if %11 {
      %c0_10 = arith.constant 0 : index
      %c0_11 = arith.constant 0 : index
      %12 = vector.load %arg7[%c0_10, %c0_11] : memref<16x128xf32, #tpu.memory_space<vmem>>, vector<16x128xf32>
      %c0_12 = arith.constant 0 : index
      %c0_13 = arith.constant 0 : index
      %13 = vector.load %arg5[%c0_12, %c0_13] : memref<1x128xf32, #tpu.memory_space<vmem>>, vector<1x128xf32>
      %14 = vector.broadcast %13 : vector<1x128xf32> to vector<16x128xf32>
      %15 = arith.addf %12, %14 : vector<16x128xf32>
      %c0_14 = arith.constant 0 : index
      %c0_15 = arith.constant 0 : index
      %16 = vector.load %arg6[%c0_14, %c0_15] : memref<16x128xf32, #tpu.memory_space<vmem>>, vector<16x128xf32>
      tpu.vector_store %arg6[%c0_14, %c0_15], %15 {strides = array<i32>} : memref<16x128xf32, #tpu.memory_space<vmem>>, vector<16x128xf32>,
    } else {
    }
    return
  }
  func.func @transform_0(%arg0: i32, %arg1: i32, %arg2: i32) -> (i32, i32) {
    %c0_i32 = arith.constant 0 : i32
    return %arg0, %arg2 : i32, i32
  }
  func.func @transform_1(%arg0: i32, %arg1: i32, %arg2: i32) -> (i32, i32) {
    %c0_i32 = arith.constant 0 : i32
    return %arg2, %arg1 : i32, i32
  }
  func.func @transform_2(%arg0: i32, %arg1: i32, %arg2: i32) -> (i32, i32) {
    %c0_i32 = arith.constant 0 : i32
    %c0_i32_0 = arith.constant 0 : i32
    return %c0_i32, %arg1 : i32, i32
  }
  func.func @transform_3(%arg0: i32, %arg1: i32, %arg2: i32) -> (i32, i32) {
    %c0_i32 = arith.constant 0 : i32
    return %arg0, %arg1 : i32, i32
  }
}

</mosaic_0001>

<bundles_post_ra>
// kernel: argpt_forward.15
= control target key start
LH: loop header
LB: loop body
LE: loop exit
PB: predicated region body
PF: predicated region fallthrough
CT: control target
= control target key end

     0   :  { %vm19_vm0 = vcmask 523264   ;;  %v110_v1 = vmov 0.0   ;;  %vm47_vm1 = vcmask 261120   ;;  %vm85_vm2 = vcmask 519168   ;;  %s153_s1 = inlined_call_operand.vmem [shape: bf16[32,64], index: 1, kind: input, shape index: {}]   ;;  %s154_s2 = inlined_call_operand.vmem [shape: f32[1,64], index: 2, kind: input, shape index: {}]   ;;  %s155_s0 = inlined_call_operand.vmem [shape: bf16[16,32], index: 0, kind: input, shape index: {}]   ;;  %s156_s3 = inlined_call_operand.vmem [shape: bf16[16,64], index: 3, kind: output, shape index: {}]  }
   0x1   :  { %v107_v0 = vld [vmem:[%s153_s1 + $0x8] sm:$0xff]  ;;  %20 = vst.msk [vmem:[#allocation2] sm:$0xff] %vm19_vm0, %v110_v1  ;;  %v106_v2 = vld [vmem:[%s153_s1] sm:$0xff] }
   0x2   :  { %21 = vst.msk [vmem:[#allocation2 + $0x8] sm:$0xff] %vm19_vm0, %v110_v1  ;;  %57 = vmatpush.bf16.msra.mxu0 %v107_v0  ;;  %v105_v3 = vld [vmem:[%s155_s0] sm:$0xff] }
   0x3   :  { %v109_v8 = vld [vmem:[%s154_s2] ss:$0 sm:$0xff] }
   0x6   :  { %58 = vmatpush.bf16.msra.mxu0 %v106_v2 }
   0x8   :  { %v22_v4 = vld [vmem:[#allocation2] sm:$0xff] }
   0x9   :  { %104 = vmatmul.msk.bf16.vlgmr.msra.gmra.mxu0 %vm47_vm1, %v105_v3  ;;  %v23_v7 = vld [vmem:[#allocation2 + $0x8] sm:$0xff] }
  0x86   :  { %v60_v5 = vpop.f32.mrf.mxu0 }
  0x87   :  { %v65_v6 = vadd.f32 %v60_v5, %v22_v4 }
  0x89   :  { %68 = vst.msk [vmem:[#allocation2] sm:$0xff] %vm19_vm0, %v65_v6 }
  0x8e   :  { %v62_v9 = vpop.f32.mrf.mxu0 }
  0x8f   :  { %v66_v10 = vadd.f32 %v62_v9, %v23_v7 }
  0x90   :  { %v73_v11 = vld [vmem:[#allocation2] sm:$0xff] }
  0x91   :  { %v79_v12 = vadd.f32 %v109_v8, %v73_v11  ;;  %69 = vst.msk [vmem:[#allocation2 + $0x8] sm:$0xff] %vm19_vm0, %v66_v10 }
  0x93   :  { %v81_v13 = vmax.f32 %v79_v12, 0.0 }
  0x95   :  { %v83_v14 = vpack.c.bf16 %v81_v13, %v81_v13 }
  0x97   :  { %86 = vst.msk [vmem:[%s156_s3] sm:$0xf] %vm85_vm2, %v83_v14 }
  0x98   :  { %v74_v15 = vld [vmem:[#allocation2 + $0x8] sm:$0xff] }
  0x99   :  { %v80_v16 = vadd.f32 %v109_v8, %v74_v15 }
  0x9b   :  { %v82_v17 = vmax.f32 %v80_v16, 0.0 }
  0x9d   :  { %v84_v18 = vpack.c.bf16 %v82_v17, %v82_v17 }
  0x9f   :  { %87 = vst.msk [vmem:[%s156_s3 + $0x4] sm:$0xf] %vm85_vm2, %v84_v18 }

// kernel: argpt_forward.14
= control target key start
LH: loop header
LB: loop body
LE: loop exit
PB: predicated region body
PF: predicated region fallthrough
CT: control target
= control target key end

     0   :  { %vm28_vm0 = vcmask 261120   ;;  %v198_v1 = vmov 0.0   ;;  %v199_v22 = vmov 32.0   ;;  %vm160_vm6 = vcmask 257024   ;;  %s271_s1 = inlined_call_operand.vmem [shape: bf16[32,32], index: 1, kind: input, shape index: {}]   ;;  %s272_s0 = inlined_call_operand.vmem [shape: bf16[16,32], index: 0, kind: input, shape index: {}]   ;;  %s273_s2 = inlined_call_operand.vmem [shape: f32[1,32], index: 2, kind: input, shape index: {}]   ;;  %s274_s3 = inlined_call_operand.vmem [shape: bf16[16,32], index: 3, kind: input, shape index: {}]   ;;  %s275_s4 = inlined_call_operand.vmem [shape: f32[1,32], index: 4, kind: input, shape index: {}]   ;;  %s276_s5 = inlined_call_operand.vmem [shape: f32[1,32], index: 5, kind: input, shape index: {}]   ;;  %s277_s6 = inlined_call_operand.vmem [shape: bf16[16,32], index: 6, kind: output, shape index: {}]  }
   0x1   :  { %v182_v0 = vld [vmem:[%s271_s1 + $0x8] sm:$0xff]  ;;  %29 = vst.msk [vmem:[#allocation2] sm:$0xff] %vm28_vm0, %v198_v1  ;;  %v181_v2 = vld [vmem:[%s271_s1] sm:$0xff]  ;;  %192 = vrcp.f32 %v199_v22 }
   0x2   :  { %30 = vst.msk [vmem:[#allocation2 + $0x8] sm:$0xff] %vm28_vm0, %v198_v1  ;;  %66 = vmatpush.bf16.msra.mxu0 %v182_v0  ;;  %v180_v3 = vld [vmem:[%s272_s0] sm:$0xff] }
   0x3   :  { %v184_v8 = vld [vmem:[%s274_s3] sm:$0xff]  }
   0x4   :  { %v189_v9 = vld [vmem:[%s273_s2] ss:$0 sm:$0xff]  ;;  %v185_v12 = vunpack.c.l.bf16 %v184_v8  ;;  %v186_v17 = vunpack.c.h.bf16 %v184_v8 }
   0x5   :  { %v190_v53 = vld [vmem:[%s275_s4] ss:$0 sm:$0xff] }
   0x6   :  { %67 = vmatpush.bf16.msra.mxu0 %v181_v2  ;;  %v191_v56 = vld [vmem:[%s276_s5] ss:$0 sm:$0xff] }
   0x7   :  { %v193_v23 = vpop.eup %192 }
   0x8   :  { %v31_v4 = vld [vmem:[#allocation2] sm:$0xff]  ;;  %v104_v24 = vmul.f32 32.0, %v193_v23  ;;  %vm108_vm1 = vweird.f32 %v193_v23 }
   0x9   :  { %179 = vmatmul.msk.bf16.vlgmr.msra.gmra.mxu0 %vm28_vm0, %v180_v3  ;;  %v32_v7 = vld [vmem:[#allocation2 + $0x8] sm:$0xff] }
   0xa   :  { %v105_v25 = vsub.f32 1.0, %v104_v24 }
   0xc   :  { %v106_v26 = vmul.f32 %v193_v23, %v105_v25 }
   0xe   :  { %v107_v27 = vadd.f32 %v193_v23, %v106_v26 }
  0x10   :  { %v109_v28 = vsel %vm108_vm1, %v193_v23, %v107_v27 }
  0x86   :  { %v69_v5 = vpop.f32.mrf.mxu0 }
  0x87   :  { %v74_v6 = vadd.f32 %v69_v5, %v31_v4 }
  0x89   :  { %76 = vst.msk [vmem:[#allocation2] sm:$0xff] %vm28_vm0, %v74_v6 }
  0x8e   :  { %v71_v10 = vpop.f32.mrf.mxu0 }
  0x8f   :  { %v75_v11 = vadd.f32 %v71_v10, %v32_v7 }
  0x90   :  { %v81_v13 = vld [vmem:[#allocation2] sm:$0xff] }
  0x91   :  { %77 = vst.msk [vmem:[#allocation2 + $0x8] sm:$0xff] %vm28_vm0, %v75_v11  ;;  %v87_v14 = vadd.f32 %v189_v9, %v81_v13 }
  0x93   :  { %v93_v15 = vadd.f32 %v185_v12, %v87_v14 }
  0x95   :  { %v97_v16 = vsel %vm28_vm0, %v93_v15, 0.0 }
  0x96   :  { %98 = vadd.xlane.f32.xlu0 %v97_v16 }
  0x98   :  { %v82_v18 = vld [vmem:[#allocation2 + $0x8] sm:$0xff] }
  0x99   :  { %v88_v19 = vadd.f32 %v189_v9, %v82_v18 }
  0x9b   :  { %v94_v20 = vadd.f32 %v186_v17, %v88_v19 }
  0x9d   :  { %v100_v21 = vsel %vm28_vm0, %v94_v20, 0.0 }
  0x9e   :  { %101 = vadd.xlane.f32.xlu0 %v100_v21 }
 0x109   :  { %v99_v29 = vpop.xlane.xlu0 %98 }
 0x10a   :  { %v110_v30 = vmul.f32 %v109_v28, %v99_v29 }
 0x10c   :  { %v112_v31 = vsub.f32 %v93_v15, %v110_v30 }
 0x10e   :  { %v114_v32 = vmul.f32 %v112_v31, %v112_v31 }
 0x110   :  { %v116_v33 = vsel %vm28_vm0, %v114_v32, 0.0 }
 0x111   :  { %117 = vadd.xlane.f32.xlu1 %v116_v33  ;;  %v102_v34 = vpop.xlane.xlu0 %101 }
 0x112   :  { %v111_v35 = vmul.f32 %v109_v28, %v102_v34 }
 0x114   :  { %v113_v36 = vsub.f32 %v94_v20, %v111_v35 }
 0x116   :  { %v115_v37 = vmul.f32 %v113_v36, %v113_v36 }
 0x118   :  { %v119_v38 = vsel %vm28_vm0, %v115_v37, 0.0 }
 0x119   :  { %120 = vadd.xlane.f32.xlu1 %v119_v38 }
 0x184   :  { %v118_v39 = vpop.xlane.xlu1 %117 }
 0x185   :  { %v122_v40 = vmul.f32 %v118_v39, %v109_v28 }
 0x187   :  { %v124_v41 = vadd.f32 1e-05, %v122_v40 }
 0x189   :  { %194 = vrsqrt.f32 %v124_v41  ;;  %vm132_vm3 = vweird.f32 %v124_v41 }
 0x18c   :  { %v121_v42 = vpop.xlane.xlu1 %120 }
 0x18d   :  { %v123_v43 = vmul.f32 %v121_v42, %v109_v28 }
 0x18f   :  { %v195_v44 = vpop.eup %194  ;;  %v125_v45 = vadd.f32 1e-05, %v123_v43 }
 0x190   :  { %v127_v46 = vmul.f32 %v195_v44, %v124_v41  ;;  %vm133_vm2 = vweird.f32 %v195_v44 }
 0x191   :  { %196 = vrsqrt.f32 %v125_v45  ;;  %vm134_vm4 = vmor %vm132_vm3, %vm133_vm2  ;;  %vm142_vm7 = vweird.f32 %v125_v45 }
 0x192   :  { %v128_v47 = vmul.f32 %v195_v44, %v127_v46 }
 0x194   :  { %v129_v48 = vmul.f32 0.5, %v128_v47 }
 0x196   :  { %v130_v49 = vsub.f32 1.5, %v129_v48 }
 0x197   :  { %v197_v50 = vpop.eup %196 }
 0x198   :  { %v131_v51 = vmul.f32 %v195_v44, %v130_v49  ;;  %v137_v52 = vmul.f32 %v197_v50, %v125_v45  ;;  %vm143_vm5 = vweird.f32 %v197_v50 }
 0x199   :  { %vm144_vm8 = vmor %vm142_vm7, %vm143_vm5 }
 0x19a   :  { %v135_v54 = vsel %vm134_vm4, %v195_v44, %v131_v51  ;;  %v138_v55 = vmul.f32 %v197_v50, %v137_v52 }
 0x19b   :  { %v146_v57 = vmul.f32 %v135_v54, %v112_v31 }
 0x19c   :  { %v139_v58 = vmul.f32 0.5, %v138_v55 }
 0x19d   :  { %v151_v59 = vmul.f32 %v190_v53, %v146_v57 }
 0x19e   :  { %v140_v60 = vsub.f32 1.5, %v139_v58 }
 0x19f   :  { %v156_v61 = vadd.f32 %v191_v56, %v151_v59 }
 0x1a0   :  { %v141_v62 = vmul.f32 %v197_v50, %v140_v60 }
 0x1a1   :  { %v158_v63 = vpack.c.bf16 %v156_v61, %v156_v61 }
 0x1a2   :  { %v145_v0 = vsel %vm144_vm8, %v197_v50, %v141_v62 }
 0x1a3   :  { %161 = vst.msk [vmem:[%s277_s6] sm:$0xf] %vm160_vm6, %v158_v63  ;;  %v147_v1 = vmul.f32 %v145_v0, %v113_v36 }
 0x1a5   :  { %v152_v2 = vmul.f32 %v190_v53, %v147_v1 }
 0x1a7   :  { %v157_v3 = vadd.f32 %v191_v56, %v152_v2 }
 0x1a9   :  { %v159_v4 = vpack.c.bf16 %v157_v3, %v157_v3 }
 0x1ab   :  { %162 = vst.msk [vmem:[%s277_s6 + $0x4] sm:$0xf] %vm160_vm6, %v159_v4 }

// kernel: argpt_forward.12
= control target key start
LH: loop header
LB: loop body
LE: loop exit
PB: predicated region body
PF: predicated region fallthrough
CT: control target
= control target key end

     0   :  { %vm19_vm0 = vcmask 785408   ;;  %v108_v1 = vmov 0.0   ;;  %vm47_vm1 = vcmask 261120   ;;  %vm83_vm2 = vcmask 781312   ;;  %s151_s1 = inlined_call_operand.vmem [shape: bf16[32,96], index: 1, kind: input, shape index: {}]   ;;  %s152_s2 = inlined_call_operand.vmem [shape: f32[1,96], index: 2, kind: input, shape index: {}]   ;;  %s153_s0 = inlined_call_operand.vmem [shape: bf16[16,32], index: 0, kind: input, shape index: {}]   ;;  %s154_s3 = inlined_call_operand.vmem [shape: bf16[16,96], index: 3, kind: output, shape index: {}]  }
   0x1   :  { %v105_v0 = vld [vmem:[%s151_s1 + $0x8] sm:$0xff]  ;;  %20 = vst.msk [vmem:[#allocation2] sm:$0xff] %vm19_vm0, %v108_v1  ;;  %v104_v2 = vld [vmem:[%s151_s1] sm:$0xff] }
   0x2   :  { %21 = vst.msk [vmem:[#allocation2 + $0x8] sm:$0xff] %vm19_vm0, %v108_v1  ;;  %57 = vmatpush.bf16.msra.mxu0 %v105_v0  ;;  %v103_v3 = vld [vmem:[%s153_s0] sm:$0xff] }
   0x3   :  { %v107_v8 = vld [vmem:[%s152_s2] ss:$0 sm:$0xff] }
   0x6   :  { %58 = vmatpush.bf16.msra.mxu0 %v104_v2 }
   0x8   :  { %v22_v4 = vld [vmem:[#allocation2] sm:$0xff] }
   0x9   :  { %102 = vmatmul.msk.bf16.vlgmr.msra.gmra.mxu0 %vm47_vm1, %v103_v3  ;;  %v23_v7 = vld [vmem:[#allocation2 + $0x8] sm:$0xff] }
  0x86   :  { %v60_v5 = vpop.f32.mrf.mxu0 }
  0x87   :  { %v65_v6 = vadd.f32 %v60_v5, %v22_v4 }
  0x89   :  { %68 = vst.msk [vmem:[#allocation2] sm:$0xff] %vm19_vm0, %v65_v6 }
  0x8e   :  { %v62_v9 = vpop.f32.mrf.mxu0 }
  0x8f   :  { %v66_v10 = vadd.f32 %v62_v9, %v23_v7 }
  0x90   :  { %v73_v11 = vld [vmem:[#allocation2] sm:$0xff] }
  0x91   :  { %v79_v12 = vadd.f32 %v107_v8, %v73_v11  ;;  %69 = vst.msk [vmem:[#allocation2 + $0x8] sm:$0xff] %vm19_vm0, %v66_v10 }
  0x93   :  { %v81_v13 = vpack.c.bf16 %v79_v12, %v79_v12 }
  0x95   :  { %84 = vst.msk [vmem:[%s154_s3] sm:$0xf] %vm83_vm2, %v81_v13 }
  0x98   :  { %v74_v14 = vld [vmem:[#allocation2 + $0x8] sm:$0xff] }
  0x99   :  { %v80_v15 = vadd.f32 %v107_v8, %v74_v14 }
  0x9b   :  { %v82_v16 = vpack.c.bf16 %v80_v15, %v80_v15 }
  0x9d   :  { %85 = vst.msk [vmem:[%s154_s3 + $0x4] sm:$0xf] %vm83_vm2, %v82_v16 }

// kernel: argpt_forward.13
= control target key start
LH: loop header
LB: loop body
LE: loop exit
PB: predicated region body
PF: predicated region fallthrough
CT: control target
= control target key end

     0   :  { %s530_s6 = smov 0   ;;  %s612_s0 = inlined_call_operand.vmem [shape: bf16[2,8,96], index: 0, kind: input, shape index: {}]   ;;  %s613_s1 = inlined_call_operand.vmem [shape: bf16[2,8,32], index: 1, kind: output, shape index: {}]  }
   0x1 LB: > { %s443_s7 = sadd.s32 4294967295, %s504_s6   ;;  %p447_p0 = scmp.ge.s32.totalorder %s504_s6, 1  ;;  %s504_s6 = sphi %s530_s6, %s11_s6  }
   0x2   : > { %p86_p1 = scmp.lt.s32.totalorder %s504_s6, 3 }
   0x4   : > { %p87_p2 = pnand %p447_p0, %p86_p1 }
   0x5   : > { %p104_p3 = scmp.lt.s32.totalorder (!%p87_p2), %s443_s7, 1  ;;  %s506_s12 = smov (!%p87_p2), 96  }
   0x6   : > { %90 = sbr.rel (%p87_p2) target bundleno = 1198 (0x4ae), region = 24  ;;  %s507_s13 = smov (!%p87_p2), 88  }
   0x7   : > { %s508_s14 = smov (!%p87_p2), 120   ;;  %s509_s15 = smov (!%p87_p2), 64  }
   0x8   : > { %s510_s16 = smov (!%p87_p2), 80   ;;  %s511_s17 = smov (!%p87_p2), 72  }
   0x9   : > { %s512_s18 = smov (!%p87_p2), 112   ;;  %s513_s19 = smov (!%p87_p2), 104  }
   0xa   : > { %s514_s20 = smov (!%p87_p2), 56   ;;  %s515_s21 = smov (!%p87_p2), 40  }
   0xb   : > { %s615_s7 = smov (!%p104_p3, %s443_s7), 1  ;;  %vm124_vm0 = vcmask 64512   ;;  %v113_v17 = vlaneseq  ;;  %vm163_vm2 = vcmask 1043456   ;;  %vm181_vm3 = vcmask 60416   ;;  %s516_s25 = smov 48  }
   0xc   : > { %s448_s8 = sshll.u32 %s615_s7, 2  ;;  %s517_s26 = smov 8   ;;  %vm250_vm4 = vcmask 126016   ;;  %vm319_vm5 = vcmask 191616   ;;  %vm388_vm6 = vcmask 257216  }
   0xd   : > { %s107_s11 = scalar_lea.vmem %s612_s0, %s448_s8  ;;  %v557_v18 = vshrl.u32 %v113_v17, 7  ;;  %v559_v19 = vand.u32 127, %v113_v17  ;;  %s589_s24 = scalar_lea.vmem %s613_s1, %s448_s8 }
   0xe   : > { %v118_v0 = vld [vmem:[%s107_s11] sm:$0xf]  ;;  %s518_s27 = smov 16   ;;  %s519_s28 = smov 24  }
   0xf   : > { %v120_v1 = vunpack.c.l.b16 %v118_v0  ;;  %v183_v3 = vld [vmem:[%s107_s11] sm:$0xf]  ;;  %vm117_vm1 = vcmp.le.s32.totalorder %v559_v19, %v557_v18 }
  0x10   : > { %v185_v4 = vunpack.c.l.b16 %v183_v3  ;;  %v252_v8 = vld [vmem:[%s107_s11] sm:$0xf] }
  0x11   : > { %v121_v2 = vpack.c.b16 %v120_v1, %v120_v1  ;;  %v254_v10 = vunpack.c.l.b16 %v252_v8  ;;  %v321_v12 = vld [vmem:[%s107_s11] sm:$0xf] }
  0x12   : > { %v546_v5 = vpack.c.b16 %v185_v4, %v185_v4  ;;  %v323_v14 = vunpack.c.l.b16 %v321_v12 }
  0x13   : > { %122 = vrot.lane.b32.xlu0 %v121_v2, %s506_s12  ;;  %v553_v13 = vpack.c.b16 %v254_v10, %v254_v10 }
  0x14   : > { %189 = vrot.lane.b32.xlu1 %v546_v5, %s507_s13  ;;  %187 = vrot.lane.b32.xlu2 %v546_v5, %s508_s14  ;;  %v324_v16 = vpack.c.b16 %v323_v14, %v323_v14 }
  0x1c   : > { %158 = vrot.lane.b32.xlu2 %v121_v2, %s509_s15 }
  0x24   : > { %258 = vrot.lane.b32.xlu2 %v553_v13, %s510_s16 }
  0x2c   : > { %327 = vrot.lane.b32.xlu2 %v324_v16, %s511_s17 }
  0x34   : > { %256 = vrot.lane.b32.xlu2 %v553_v13, %s512_s18 }
  0x3c   : > { %325 = vrot.lane.b32.xlu2 %v324_v16, %s513_s19 }
  0x6e   : > { %v188_v15 = vpop.permute.xlu2 %187 }
  0x76   : > { %v159_v25 = vpop.permute.xlu2 %158 }
  0x77   : > { %v165_v30 = vsel %vm163_vm2, %v159_v25, 0 }
  0x78   : > { %174 = vmatpush.bf16.msra.mxu1 %v165_v30 }
  0x7e   : > { %v259_v26 = vpop.permute.xlu2 %258 }
  0x7f   : > { %v264_v28 = vsel %vm124_vm0, %v259_v26, 0 }
  0x80   : > { %273 = vmatpush.bf16.xpose.msrb.mxu1 %v264_v28 }
  0x85   : > { %v123_v6 = vpop.permute.xlu0 %122 }
  0x86   : > { %v129_v7 = vsel %vm124_vm0, %v123_v6, 0  ;;  %v190_v9 = vpop.permute.xlu1 %189  ;;  %v328_v27 = vpop.permute.xlu2 %327 }
  0x87   : > { %138 = vmatpush.bf16.xpose.msra.mxu0 %v129_v7  ;;  %v195_v11 = vsel %vm124_vm0, %v190_v9, 0  ;;  %v333_v29 = vsel %vm124_vm0, %v328_v27, 0 }
  0x88   : > { %204 = vmatpush.bf16.xpose.msra.mxu2 %v195_v11 }
  0x8e   : > { %450 = vmatmul.msk.bf16.vlgmr.msra.gmra.mxu0 %vm124_vm0, %v118_v0  ;;  %v257_v31 = vpop.permute.xlu2 %256 }
  0x8f   : > { %452 = vmatmul.msk.bf16.vlgmr.msra.gmra.mxu2 %vm124_vm0, %v188_v15  ;;  %342 = vmatpush.bf16.xpose.msrb.mxu0 %v333_v29 }
  0x96   : > { %v326_v33 = vpop.permute.xlu2 %325 }
  0x9e   : > { %456 = vmatmul.msk.bf16.vlgmr.msrb.gmra.mxu0 %vm124_vm0, %v326_v33 }
 0x10b   : > { %v140_v20 = vpop.f32.mrf.mxu0 }
 0x10c   : > { %v144_v21 = vmul.f32 0.35355338, %v140_v20 }
 0x10e   : > { %v145_v22 = vsel %vm117_vm1, %v144_v21, -1e+09 }
 0x10f   : > { %v146_v23 = vsel %vm124_vm0, %v145_v22, -inf }
 0x110   : > { %147 = vmax.xlane.f32.xlu0 %v146_v23 }
 0x112   : > { %v206_v32 = vpop.f32.mrf.mxu2 }
 0x113   : > { %v142_v24 = vpop.f32.mrf.mxu0  ;;  %v210_v34 = vmul.f32 0.35355338, %v206_v32 }
 0x115   : > { %v211_v35 = vsel %vm117_vm1, %v210_v34, -1e+09 }
 0x116   : > { %v212_v37 = vsel %vm124_vm0, %v211_v35, -inf }
 0x117   : > { %213 = vmax.xlane.f32.xlu2 %v212_v37 }
 0x11a   : > { %v208_v40 = vpop.f32.mrf.mxu2 }
 0x11b   : > { %v344_v43 = vpop.f32.mrf.mxu0 }
 0x11c   : > { %v348_v44 = vmul.f32 0.35355338, %v344_v43 }
 0x11e   : > { %v349_v45 = vsel %vm117_vm1, %v348_v44, -1e+09 }
 0x11f   : > { %v350_v47 = vsel %vm124_vm0, %v349_v45, -inf }
 0x123   : > { %v346_v48 = vpop.f32.mrf.mxu0 }
 0x183   : > { %v148_v36 = vpop.xlane.xlu0 %147 }
 0x184   : > { %v149_v38 = vsub.f32 %v145_v22, %v148_v36 }
 0x186   : > { %v150_v39 = vmul.f32 1.442695, %v149_v38 }
 0x188   : > { %482 = vpow2.f32 %v150_v39 }
 0x18a   : > { %v214_v54 = vpop.xlane.xlu2 %213 }
 0x18b   : > { %v215_v56 = vsub.f32 %v211_v35, %v214_v54 }
 0x18d   : > { %v216_v57 = vmul.f32 1.442695, %v215_v56 }
 0x18e   : > { %v483_v41 = vpop.eup %482 }
 0x18f   : > { %v152_v42 = vsel %vm124_vm0, %v483_v41, 0.0 }
 0x190   : > { %153 = vadd.xlane.f32.xlu1 %v152_v42 }
 0x198   : > { %351 = vmax.xlane.f32.xlu1 %v350_v47 }
 0x1b1   : > { %224 = vrot.lane.b32.xlu1 %v546_v5, %s514_s20 }
 0x1b9   : > { %362 = vrot.lane.b32.xlu1 %v324_v16, %s515_s21 }
 0x203   : > { %v154_v46 = vpop.xlane.xlu1 %153 }
 0x204   : > { %484 = vrcp.f32 %v154_v46 }
 0x205   : > { %486 = vpow2.f32 %v216_v57 }
 0x20a   : > { %v485_v49 = vpop.eup %484 }
 0x20b   : > { %v156_v50 = vmul.f32 %v485_v49, %v483_v41  ;;  %v352_v58 = vpop.xlane.xlu1 %351  ;;  %v487_v2 = vpop.eup %486 }
 0x20c   : > { %v353_v61 = vsub.f32 %v349_v45, %v352_v58  ;;  %v218_v3 = vsel %vm124_vm0, %v487_v2, 0.0 }
 0x20d   : > { %v157_v51 = vpack.c.bf16 %v156_v50, %v156_v50 }
 0x20e   : > { %v354_v0 = vmul.f32 1.442695, %v353_v61 }
 0x20f   : > { %451 = vmatmul.msk.bf16.vlgmr.msra.gmra.mxu1 %vm124_vm0, %v157_v51 }
 0x210   : > { %488 = vpow2.f32 %v354_v0 }
 0x216   : > { %v489_v4 = vpop.eup %488 }
 0x217   : > { %v356_v5 = vsel %vm124_vm0, %v489_v4, 0.0 }
 0x21f   : > { %454 = vmatmul.msk.bf16.vlgmr.msrb.gmra.mxu1 %vm124_vm0, %v257_v31 }
 0x223   : > { %v225_v6 = vpop.permute.xlu1 %224 }
 0x224   : > { %v230_v7 = vsel %vm163_vm2, %v225_v6, 0 }
 0x225   : > { %239 = vmatpush.bf16.msra.mxu3 %v230_v7 }
 0x22b   : > { %v363_v8 = vpop.permute.xlu1 %362 }
 0x22c   : > { %v368_v9 = vsel %vm163_vm2, %v363_v8, 0 }
 0x22d   : > { %377 = vmatpush.bf16.msrb.mxu2 %v368_v9 }
 0x28c   : > { %v176_v52 = vpop.f32.mrf.mxu1 }
 0x28d   : > { %v180_v53 = vpack.c.bf16 %v176_v52, %v176_v52 }
 0x28f   : > { %182 = vst.msk [vmem:[%s589_s24] sm:$0xf] %vm181_vm3, %v180_v53 }
 0x294   : > { %v178_v55 = vpop.f32.mrf.mxu1 }
 0x29c   : > { %v275_v59 = vpop.f32.mrf.mxu1 }
 0x29d   : > { %v279_v60 = vmul.f32 0.35355338, %v275_v59 }
 0x29f   : > { %v280_v62 = vsel %vm117_vm1, %v279_v60, -1e+09 }
 0x2a0   : > { %v281_v63 = vsel %vm124_vm0, %v280_v62, -inf }
 0x2a1   : > { %282 = vmax.xlane.f32.xlu0 %v281_v63 }
 0x2a4   : > { %v277_v1 = vpop.f32.mrf.mxu1 }
 0x2a9   : > { %219 = vadd.xlane.f32.xlu0 %v218_v3 }
 0x2b1   : > { %357 = vadd.xlane.f32.xlu0 %v356_v5 }
 0x314   : > { %v283_v10 = vpop.xlane.xlu0 %282 }
 0x315   : > { %v284_v11 = vsub.f32 %v280_v62, %v283_v10 }
 0x317   : > { %v285_v12 = vmul.f32 1.442695, %v284_v11 }
 0x319   : > { %490 = vpow2.f32 %v285_v12 }
 0x31c   : > { %v220_v14 = vpop.xlane.xlu0 %219 }
 0x31d   : > { %492 = vrcp.f32 %v220_v14 }
 0x31f   : > { %v491_v15 = vpop.eup %490 }
 0x320   : > { %v287_v16 = vsel %vm124_vm0, %v491_v15, 0.0 }
 0x321   : > { %288 = vadd.xlane.f32.xlu0 %v287_v16 }
 0x323   : > { %v493_v17 = vpop.eup %492 }
 0x324   : > { %v358_v18 = vpop.xlane.xlu0 %357  ;;  %v222_v19 = vmul.f32 %v493_v17, %v487_v2 }
 0x325   : > { %494 = vrcp.f32 %v358_v18 }
 0x326   : > { %v223_v20 = vpack.c.bf16 %v222_v19, %v222_v19 }
 0x328   : > { %453 = vmatmul.msk.bf16.vlgmr.msra.gmra.mxu3 %vm124_vm0, %v223_v20 }
 0x32b   : > { %v495_v21 = vpop.eup %494 }
 0x32c   : > { %v360_v22 = vmul.f32 %v495_v21, %v489_v4 }
 0x32e   : > { %v361_v23 = vpack.c.bf16 %v360_v22, %v360_v22 }
 0x330   : > { %457 = vmatmul.msk.bf16.vlgmr.msrb.gmra.mxu2 %vm124_vm0, %v361_v23 }
 0x335   : > { %293 = vrot.lane.b32.xlu0 %v553_v13, %s516_s25 }
 0x394   : > { %v289_v24 = vpop.xlane.xlu0 %288 }
 0x395   : > { %496 = vrcp.f32 %v289_v24 }
 0x39b   : > { %v497_v25 = vpop.eup %496 }
 0x39c   : > { %v291_v26 = vmul.f32 %v497_v25, %v491_v15 }
 0x39e   : > { %v292_v29 = vpack.c.bf16 %v291_v26, %v291_v26 }
 0x3a7   : > { %v294_v27 = vpop.permute.xlu0 %293 }
 0x3a8   : > { %v299_v28 = vsel %vm163_vm2, %v294_v27, 0 }
 0x3a9   : > { %308 = vmatpush.bf16.msrb.mxu3 %v299_v28 }
 0x3ab   : > { %v241_v30 = vpop.f32.mrf.mxu3 }
 0x3ac   : > { %v245_v31 = vpack.c.bf16 %v241_v30, %v241_v30  ;;  %455 = vmatmul.msk.bf16.vlgmr.msrb.gmra.mxu3 %vm124_vm0, %v292_v29 }
 0x3ae   : > { %247 = vrot.lane.b32.xlu2 %v245_v31, %s517_s26 }
 0x3b3   : > { %v243_v32 = vpop.f32.mrf.mxu3  ;;  %v379_v33 = vpop.f32.mrf.mxu2 }
 0x3b4   : > { %v383_v38 = vpack.c.bf16 %v379_v33, %v379_v33 }
 0x3bb   : > { %v381_v13 = vpop.f32.mrf.mxu2 }
 0x408   : > { %v248_v34 = vpop.permute.xlu2 %247 }
 0x409   : > { %251 = vst.msk [vmem:[%s589_s24] sm:$0xf] %vm250_vm4, %v248_v34 }
 0x42f   : > { %v310_v35 = vpop.f32.mrf.mxu3 }
 0x430   : > { %v314_v36 = vpack.c.bf16 %v310_v35, %v310_v35 }
 0x432   : > { %316 = vrot.lane.b32.xlu1 %v314_v36, %s518_s27 }
 0x437   : > { %v312_v37 = vpop.f32.mrf.mxu3 }
 0x43a   : > { %385 = vrot.lane.b32.xlu1 %v383_v38, %s519_s28 }
 0x4a4   : > { %v317_v39 = vpop.permute.xlu1 %316 }
 0x4a5   : > { %320 = vst.msk [vmem:[%s589_s24] sm:$0xf] %vm319_vm5, %v317_v39 }
 0x4ac   : > { %v386_v40 = vpop.permute.xlu1 %385 }
 0x4ad   : > { %389 = vst.msk [vmem:[%s589_s24] sm:$0xf] %vm388_vm6, %v386_v40 }
 0x4ae PF: > { %s11_s6 = sadd.s32 1, %s504_s6  }
 0x4af   : > { %p8_p4 = scmp.ge.s32.totalorder %s11_s6, 4  }
 0x4b1   :  { %10 = sbr.rel (!%p8_p4) target bundleno = 1 (0x1), region = 54 }

// kernel: argpt_forward.22
= control target key start
LH: loop header
LB: loop body
LE: loop exit
PB: predicated region body
PF: predicated region fallthrough
CT: control target
= control target key end

     0   :  { %vm20_vm0 = vcmask 261120   ;;  %v104_v5 = vmov 32.0   ;;  %vm84_vm6 = vcmask 257024   ;;  %s144_s0 = inlined_call_operand.vmem [shape: bf16[16,32], index: 0, kind: input, shape index: {}]   ;;  %s145_s1 = inlined_call_operand.vmem [shape: f32[1,32], index: 1, kind: input, shape index: {}]   ;;  %s146_s2 = inlined_call_operand.vmem [shape: f32[1,32], index: 2, kind: input, shape index: {}]   ;;  %s147_s3 = inlined_call_operand.vmem [shape: bf16[16,32], index: 3, kind: output, shape index: {}]  }
   0x1   :  { %v92_v0 = vld [vmem:[%s144_s0] sm:$0xff]   ;;  %98 = vrcp.f32 %v104_v5 }
   0x2   :  { %v93_v1 = vunpack.c.l.bf16 %v92_v0  ;;  %v94_v3 = vunpack.c.h.bf16 %v92_v0  ;;  %v96_v36 = vld [vmem:[%s145_s1] ss:$0 sm:$0xff] }
   0x3   :  { %v97_v39 = vld [vmem:[%s146_s2] ss:$0 sm:$0xff] }
   0x4   :  { %v21_v2 = vsel %vm20_vm0, %v93_v1, 0.0  ;;  %v24_v4 = vsel %vm20_vm0, %v94_v3, 0.0 }
   0x5   :  { %22 = vadd.xlane.f32.xlu0 %v21_v2 }
   0x7   :  { %v99_v6 = vpop.eup %98 }
   0x8   :  { %v28_v7 = vmul.f32 32.0, %v99_v6  ;;  %vm32_vm1 = vweird.f32 %v99_v6 }
   0xa   :  { %v29_v8 = vsub.f32 1.0, %v28_v7 }
   0xc   :  { %v30_v9 = vmul.f32 %v99_v6, %v29_v8 }
   0xd   :  { %25 = vadd.xlane.f32.xlu0 %v24_v4 }
   0xe   :  { %v31_v10 = vadd.f32 %v99_v6, %v30_v9 }
  0x10   :  { %v33_v11 = vsel %vm32_vm1, %v99_v6, %v31_v10 }
  0x78   :  { %v23_v12 = vpop.xlane.xlu0 %22 }
  0x79   :  { %v34_v13 = vmul.f32 %v33_v11, %v23_v12 }
  0x7b   :  { %v36_v14 = vsub.f32 %v93_v1, %v34_v13 }
  0x7d   :  { %v38_v15 = vmul.f32 %v36_v14, %v36_v14 }
  0x7f   :  { %v40_v16 = vsel %vm20_vm0, %v38_v15, 0.0 }
  0x80   :  { %41 = vadd.xlane.f32.xlu1 %v40_v16  ;;  %v26_v17 = vpop.xlane.xlu0 %25 }
  0x81   :  { %v35_v18 = vmul.f32 %v33_v11, %v26_v17 }
  0x83   :  { %v37_v19 = vsub.f32 %v94_v3, %v35_v18 }
  0x85   :  { %v39_v20 = vmul.f32 %v37_v19, %v37_v19 }
  0x87   :  { %v43_v21 = vsel %vm20_vm0, %v39_v20, 0.0 }
  0x88   :  { %44 = vadd.xlane.f32.xlu1 %v43_v21 }
  0xf3   :  { %v42_v22 = vpop.xlane.xlu1 %41 }
  0xf4   :  { %v46_v23 = vmul.f32 %v42_v22, %v33_v11 }
  0xf6   :  { %v48_v24 = vadd.f32 1e-05, %v46_v23 }
  0xf8   :  { %100 = vrsqrt.f32 %v48_v24  ;;  %vm56_vm3 = vweird.f32 %v48_v24 }
  0xfb   :  { %v45_v25 = vpop.xlane.xlu1 %44 }
  0xfc   :  { %v47_v26 = vmul.f32 %v45_v25, %v33_v11 }
  0xfe   :  { %v101_v27 = vpop.eup %100  ;;  %v49_v28 = vadd.f32 1e-05, %v47_v26 }
  0xff   :  { %v51_v29 = vmul.f32 %v101_v27, %v48_v24  ;;  %vm57_vm2 = vweird.f32 %v101_v27 }
 0x100   :  { %102 = vrsqrt.f32 %v49_v28  ;;  %vm58_vm4 = vmor %vm56_vm3, %vm57_vm2  ;;  %vm66_vm7 = vweird.f32 %v49_v28 }
 0x101   :  { %v52_v30 = vmul.f32 %v101_v27, %v51_v29 }
 0x103   :  { %v53_v31 = vmul.f32 0.5, %v52_v30 }
 0x105   :  { %v54_v32 = vsub.f32 1.5, %v53_v31 }
 0x106   :  { %v103_v33 = vpop.eup %102 }
 0x107   :  { %v55_v34 = vmul.f32 %v101_v27, %v54_v32  ;;  %v61_v35 = vmul.f32 %v103_v33, %v49_v28  ;;  %vm67_vm5 = vweird.f32 %v103_v33 }
 0x108   :  { %vm68_vm8 = vmor %vm66_vm7, %vm67_vm5 }
 0x109   :  { %v59_v37 = vsel %vm58_vm4, %v101_v27, %v55_v34  ;;  %v62_v38 = vmul.f32 %v103_v33, %v61_v35 }
 0x10a   :  { %v70_v40 = vmul.f32 %v59_v37, %v36_v14 }
 0x10b   :  { %v63_v41 = vmul.f32 0.5, %v62_v38 }
 0x10c   :  { %v75_v42 = vmul.f32 %v96_v36, %v70_v40 }
 0x10d   :  { %v64_v43 = vsub.f32 1.5, %v63_v41 }
 0x10e   :  { %v80_v44 = vadd.f32 %v97_v39, %v75_v42 }
 0x10f   :  { %v65_v45 = vmul.f32 %v103_v33, %v64_v43 }
 0x110   :  { %v82_v46 = vpack.c.bf16 %v80_v44, %v80_v44 }
 0x111   :  { %v69_v47 = vsel %vm68_vm8, %v103_v33, %v65_v45 }
 0x112   :  { %85 = vst.msk [vmem:[%s147_s3] sm:$0xf] %vm84_vm6, %v82_v46  ;;  %v71_v48 = vmul.f32 %v69_v47, %v37_v19 }
 0x114   :  { %v76_v49 = vmul.f32 %v96_v36, %v71_v48 }
 0x116   :  { %v81_v50 = vadd.f32 %v97_v39, %v76_v49 }
 0x118   :  { %v83_v51 = vpack.c.bf16 %v81_v50, %v81_v50 }
 0x11a   :  { %86 = vst.msk [vmem:[%s147_s3 + $0x4] sm:$0xf] %vm84_vm6, %v83_v51 }

// kernel: argpt_forward.23
= control target key start
LH: loop header
LB: loop body
LE: loop exit
PB: predicated region body
PF: predicated region fallthrough
CT: control target
= control target key end

     0   :  { %vm46_vm0 = vcmask 261120   ;;  %s140_s1 = inlined_call_operand.vmem [shape: bf16[32,128], index: 1, kind: input, shape index: {}]   ;;  %s141_s2 = inlined_call_operand.vmem [shape: f32[1,128], index: 2, kind: input, shape index: {}]   ;;  %s142_s0 = inlined_call_operand.vmem [shape: bf16[16,32], index: 0, kind: input, shape index: {}]   ;;  %s143_s3 = inlined_call_operand.vmem [shape: f32[16,128], index: 3, kind: output, shape index: {}]  }
   0x1   :  { %v100_v0 = vld [vmem:[%s140_s1 + $0x8] sm:$0xff]  ;;  %v99_v1 = vld [vmem:[%s140_s1] sm:$0xff] }
   0x2   :  { %56 = vmatpush.bf16.msra.mxu0 %v100_v0  ;;  %v98_v2 = vld [vmem:[%s142_s0] sm:$0xff] }
   0x3   :  { %v101_v3 = vld [vmem:[%s141_s2] ss:$0 sm:$0xff] }
   0x6   :  { %57 = vmatpush.bf16.msra.mxu0 %v99_v1 }
   0x9   :  { %97 = vmatmul.msk.bf16.vlgmr.msra.gmra.mxu0 %vm46_vm0, %v98_v2 }
  0x86   :  { %v59_v4 = vpop.f32.mrf.mxu0 }
  0x87   :  { %v77_v5 = vadd.f32 %v101_v3, %v59_v4 }
  0x89   :  { %79 = vst [vmem:[%s143_s3] sm:$0xff] %v77_v5 }
  0x8e   :  { %v61_v6 = vpop.f32.mrf.mxu0 }
  0x8f   :  { %v78_v7 = vadd.f32 %v101_v3, %v61_v6 }
  0x91   :  { %80 = vst [vmem:[%s143_s3 + $0x8] sm:$0xff] %v78_v7 }

// kernel: argpt_forward.16
= control target key start
LH: loop header
LB: loop body
LE: loop exit
PB: predicated region body
PF: predicated region fallthrough
CT: control target
= control target key end

     0   :  { %vm28_vm0 = vcmask 261120   ;;  %v225_v1 = vmov 0.0   ;;  %vm72_vm1 = vcmask 523264   ;;  %v226_v24 = vmov 32.0   ;;  %s303_s1 = inlined_call_operand.vmem [shape: bf16[64,32], index: 1, kind: input, shape index: {}]   ;;  %s304_s0 = inlined_call_operand.vmem [shape: bf16[16,64], index: 0, kind: input, shape index: {}]   ;;  %s305_s2 = inlined_call_operand.vmem [shape: f32[1,32], index: 2, kind: input, shape index: {}]   ;;  %s306_s3 = inlined_call_operand.vmem [shape: bf16[16,32], index: 3, kind: input, shape index: {}]   ;;  %s307_s4 = inlined_call_operand.vmem [shape: f32[1,32], index: 4, kind: input, shape index: {}]   ;;  %s308_s5 = inlined_call_operand.vmem [shape: f32[1,32], index: 5, kind: input, shape index: {}]   ;;  %s309_s6 = inlined_call_operand.vmem [shape: bf16[16,32], index: 6, kind: output, shape index: {}]  }
   0x1   :  { %v209_v0 = vld [vmem:[%s303_s1 + $0x18] sm:$0xff]  ;;  %29 = vst.msk [vmem:[#allocation2] sm:$0xff] %vm28_vm0, %v225_v1  ;;  %v208_v2 = vld [vmem:[%s303_s1 + $0x10] sm:$0xff]  ;;  %v207_v3 = vld [vmem:[%s303_s1 + $0x8] sm:$0xff]  ;;  %219 = vrcp.f32 %v226_v24  ;;  %vm177_vm7 = vcmask 257024  }
   0x2   :  { %30 = vst.msk [vmem:[#allocation2 + $0x8] sm:$0xff] %vm28_vm0, %v225_v1  ;;  %80 = vmatpush.bf16.msra.mxu0 %v209_v0  ;;  %v206_v4 = vld [vmem:[%s303_s1] sm:$0xff] }
   0x3   :  { %v205_v5 = vld [vmem:[%s304_s0] sm:$0xff] }
   0x4   :  { %v211_v10 = vld [vmem:[%s306_s3] sm:$0xff]  }
   0x5   :  { %v216_v11 = vld [vmem:[%s305_s2] ss:$0 sm:$0xff]  ;;  %v212_v14 = vunpack.c.l.bf16 %v211_v10  ;;  %v213_v19 = vunpack.c.h.bf16 %v211_v10 }
   0x6   :  { %81 = vmatpush.bf16.msra.mxu0 %v208_v2  ;;  %v217_v55 = vld [vmem:[%s307_s4] ss:$0 sm:$0xff] }
   0x7   :  { %v220_v25 = vpop.eup %219  ;;  %v218_v58 = vld [vmem:[%s308_s5] ss:$0 sm:$0xff] }
   0x8   :  { %v31_v6 = vld [vmem:[#allocation2] sm:$0xff]  ;;  %v121_v26 = vmul.f32 32.0, %v220_v25  ;;  %vm125_vm2 = vweird.f32 %v220_v25 }
   0x9   :  { %v32_v9 = vld [vmem:[#allocation2 + $0x8] sm:$0xff] }
   0xa   :  { %82 = vmatpush.bf16.msra.mxu0 %v207_v3  ;;  %v122_v27 = vsub.f32 1.0, %v121_v26 }
   0xc   :  { %v123_v28 = vmul.f32 %v220_v25, %v122_v27 }
   0xe   :  { %83 = vmatpush.bf16.msra.mxu0 %v206_v4  ;;  %v124_v29 = vadd.f32 %v220_v25, %v123_v28 }
  0x10   :  { %v126_v30 = vsel %vm125_vm2, %v220_v25, %v124_v29 }
  0x11   :  { %204 = vmatmul.msk.bf16.vlgmr.msra.gmra.mxu0 %vm72_vm1, %v205_v5 }
  0x8e   :  { %v85_v7 = vpop.f32.mrf.mxu0 }
  0x8f   :  { %v90_v8 = vadd.f32 %v85_v7, %v31_v6 }
  0x91   :  { %93 = vst.msk [vmem:[#allocation2] sm:$0xff] %vm28_vm0, %v90_v8 }
  0x96   :  { %v87_v12 = vpop.f32.mrf.mxu0 }
  0x97   :  { %v91_v13 = vadd.f32 %v87_v12, %v32_v9 }
  0x98   :  { %v98_v15 = vld [vmem:[#allocation2] sm:$0xff] }
  0x99   :  { %94 = vst.msk [vmem:[#allocation2 + $0x8] sm:$0xff] %vm28_vm0, %v91_v13  ;;  %v104_v16 = vadd.f32 %v216_v11, %v98_v15 }
  0x9b   :  { %v110_v17 = vadd.f32 %v212_v14, %v104_v16 }
  0x9d   :  { %v114_v18 = vsel %vm28_vm0, %v110_v17, 0.0 }
  0x9e   :  { %115 = vadd.xlane.f32.xlu0 %v114_v18 }
  0xa0   :  { %v99_v20 = vld [vmem:[#allocation2 + $0x8] sm:$0xff] }
  0xa1   :  { %v105_v21 = vadd.f32 %v216_v11, %v99_v20 }
  0xa3   :  { %v111_v22 = vadd.f32 %v213_v19, %v105_v21 }
  0xa5   :  { %v117_v23 = vsel %vm28_vm0, %v111_v22, 0.0 }
  0xa6   :  { %118 = vadd.xlane.f32.xlu0 %v117_v23 }
 0x111   :  { %v116_v31 = vpop.xlane.xlu0 %115 }
 0x112   :  { %v127_v32 = vmul.f32 %v126_v30, %v116_v31 }
 0x114   :  { %v129_v33 = vsub.f32 %v110_v17, %v127_v32 }
 0x116   :  { %v131_v34 = vmul.f32 %v129_v33, %v129_v33 }
 0x118   :  { %v133_v35 = vsel %vm28_vm0, %v131_v34, 0.0 }
 0x119   :  { %134 = vadd.xlane.f32.xlu1 %v133_v35  ;;  %v119_v36 = vpop.xlane.xlu0 %118 }
 0x11a   :  { %v128_v37 = vmul.f32 %v126_v30, %v119_v36 }
 0x11c   :  { %v130_v38 = vsub.f32 %v111_v22, %v128_v37 }
 0x11e   :  { %v132_v39 = vmul.f32 %v130_v38, %v130_v38 }
 0x120   :  { %v136_v40 = vsel %vm28_vm0, %v132_v39, 0.0 }
 0x121   :  { %137 = vadd.xlane.f32.xlu1 %v136_v40 }
 0x18c   :  { %v135_v41 = vpop.xlane.xlu1 %134 }
 0x18d   :  { %v139_v42 = vmul.f32 %v135_v41, %v126_v30 }
 0x18f   :  { %v141_v43 = vadd.f32 1e-05, %v139_v42 }
 0x191   :  { %221 = vrsqrt.f32 %v141_v43  ;;  %vm149_vm4 = vweird.f32 %v141_v43 }
 0x194   :  { %v138_v44 = vpop.xlane.xlu1 %137 }
 0x195   :  { %v140_v45 = vmul.f32 %v138_v44, %v126_v30 }
 0x197   :  { %v222_v46 = vpop.eup %221  ;;  %v142_v47 = vadd.f32 1e-05, %v140_v45 }
 0x198   :  { %v144_v48 = vmul.f32 %v222_v46, %v141_v43  ;;  %vm150_vm3 = vweird.f32 %v222_v46 }
 0x199   :  { %223 = vrsqrt.f32 %v142_v47  ;;  %vm151_vm5 = vmor %vm149_vm4, %vm150_vm3  ;;  %vm159_vm8 = vweird.f32 %v142_v47 }
 0x19a   :  { %v145_v49 = vmul.f32 %v222_v46, %v144_v48 }
 0x19c   :  { %v146_v50 = vmul.f32 0.5, %v145_v49 }
 0x19e   :  { %v147_v51 = vsub.f32 1.5, %v146_v50 }
 0x19f   :  { %v224_v52 = vpop.eup %223 }
 0x1a0   :  { %v148_v53 = vmul.f32 %v222_v46, %v147_v51  ;;  %v154_v54 = vmul.f32 %v224_v52, %v142_v47  ;;  %vm160_vm6 = vweird.f32 %v224_v52 }
 0x1a1   :  { %vm161_vm9 = vmor %vm159_vm8, %vm160_vm6 }
 0x1a2   :  { %v152_v56 = vsel %vm151_vm5, %v222_v46, %v148_v53  ;;  %v155_v57 = vmul.f32 %v224_v52, %v154_v54 }
 0x1a3   :  { %v163_v59 = vmul.f32 %v152_v56, %v129_v33 }
 0x1a4   :  { %v156_v60 = vmul.f32 0.5, %v155_v57 }
 0x1a5   :  { %v168_v61 = vmul.f32 %v217_v55, %v163_v59 }
 0x1a6   :  { %v157_v62 = vsub.f32 1.5, %v156_v60 }
 0x1a7   :  { %v173_v63 = vadd.f32 %v218_v58, %v168_v61 }
 0x1a8   :  { %v158_v0 = vmul.f32 %v224_v52, %v157_v62 }
 0x1a9   :  { %v175_v1 = vpack.c.bf16 %v173_v63, %v173_v63 }
 0x1aa   :  { %v162_v2 = vsel %vm161_vm9, %v224_v52, %v158_v0 }
 0x1ab   :  { %178 = vst.msk [vmem:[%s309_s6] sm:$0xf] %vm177_vm7, %v175_v1  ;;  %v164_v3 = vmul.f32 %v162_v2, %v130_v38 }
 0x1ad   :  { %v169_v4 = vmul.f32 %v217_v55, %v164_v3 }
 0x1af   :  { %v174_v5 = vadd.f32 %v218_v58, %v169_v4 }
 0x1b1   :  { %v176_v6 = vpack.c.bf16 %v174_v5, %v174_v5 }
 0x1b3   :  { %179 = vst.msk [vmem:[%s309_s6 + $0x4] sm:$0xf] %vm177_vm7, %v176_v6 }

</bundles_post_ra>
